<compile_context>
chip_gen: v7x
topology: tpu7x:2x2x1
jax: 0.10.0
libtpu: 0.0.40
codegen_flags: <defaults>
</compile_context>

<pallas_src>
import functools
import math

import jax
import jax.numpy as jnp
from jax.experimental import pallas as pl
from jax.experimental.pallas import tpu as pltpu  # noqa: F401  (TPU backend)

# Small, self-consistent config (same structure as the PyTorch CONFIG, shrunk
# so the demo shapes stay tiny: B=2, T=8, C=64, H=4, L=2, V=512).
CONFIG = {
    "BLOCK_SIZE": 16,   # max positions
    "VOCAB_SIZE": 512,
    "N_EMBD": 64,
    "N_HEAD": 4,
    "N_LAYER": 2,
    "DROPOUT": 0.1,     # identity at inference
}


# ---------------------------------------------------------------------------
# In-kernel math helpers (pure jnp / lax ops that lower cleanly in Mosaic).
# ---------------------------------------------------------------------------
def _layernorm(x, g, b, eps=1e-5):
    mu = jnp.mean(x, axis=-1, keepdims=True)
    var = jnp.mean((x - mu) ** 2, axis=-1, keepdims=True)
    return (x - mu) * jax.lax.rsqrt(var + eps) * g + b


def _erf(x):
    # Abramowitz & Stegun 7.1.26, |err| < 1.5e-7 (~f32 eps).  Matches the
    # exact erf-based torch.nn.GELU() to float32 precision with only basic
    # VPU/EUP ops (no lax.erf lowering dependency).
    a1, a2, a3, a4, a5 = 0.254829592, -0.284496736, 1.421413741, -1.453152027, 1.061405429
    p = 0.3275911
    s = jnp.where(x >= 0.0, jnp.float32(1.0), jnp.float32(-1.0))
    ax = jnp.abs(x)
    t = 1.0 / (1.0 + p * ax)
    poly = ((((a5 * t + a4) * t + a3) * t + a2) * t + a1) * t
    return s * (1.0 - poly * jnp.exp(-ax * ax))


def _gelu(x):
    # exact (erf-based) GELU, matching torch.nn.GELU() default.
    return 0.5 * x * (1.0 + _erf(x * (1.0 / math.sqrt(2.0))))


def _softmax_rows(x):
    # Exact softmax (exact divide) to stay numerically close to torch.softmax.
    x = x - jnp.max(x, axis=-1, keepdims=True)
    e = jnp.exp(x)
    return e / jnp.sum(e, axis=-1, keepdims=True)


# ---------------------------------------------------------------------------
# Fused full-forward Pallas kernel (no grid: whole model in one invocation)
# ---------------------------------------------------------------------------
def _tinygpt_kernel(
    x_ref,                                  # (R=B*T, C) activations
    wqkv_ref,                               # (L, C, 3C)   Q cols pre-scaled
    wproj_ref,                              # (L, C, C)
    vecs_ref,                               # (L, 6, C)  [ln1_g,ln1_b,ln2_g,ln2_b,bproj,b2]
    w1_ref,                                 # (L, C, 4C)
    b1_ref,                                 # (L, 4C)
    w2_ref,                                 # (L, 4C, C)
    lnf_ref,                                # (2, C)     [ln_f_g, ln_f_b]
    headw_ref,                              # (C, V)
    o_ref,                                  # (R, V)
    *, n_layer, n_head, batch, seq, mxu_dtype,
):
    x2 = x_ref[...]                         # (R, C)
    R, C = x2.shape
    H, B, T = n_head, batch, seq
    D = C // H

    def mm(a, b):
        return jnp.dot(a.astype(mxu_dtype), b.astype(mxu_dtype),
                       preferred_element_type=jnp.float32)

    def bmm(eq, a, b):
        return jnp.einsum(eq, a.astype(mxu_dtype), b.astype(mxu_dtype),
                          preferred_element_type=jnp.float32)

    # Causal additive bias, hoisted out of the layer loop; finite constant
    # (-1e30) instead of -inf so masked lanes underflow to exactly 0 in exp().
    row = jax.lax.broadcasted_iota(jnp.int32, (T, T), 0)
    col = jax.lax.broadcasted_iota(jnp.int32, (T, T), 1)
    bias = jnp.where(row >= col, jnp.float32(0.0), jnp.float32(-1e30))
    bias3 = jnp.broadcast_to(bias[None, :, :], (H * B, T, T))

    def split_heads(z2):
        # (R, C=H*D) -> (H*B, T, D) using static lane slices + leading-axis
        # stack + tile-aligned leading reshape (no mixed-minor transposes).
        parts = [z2[:, hd * D:(hd + 1) * D] for hd in range(H)]   # H x (R, D)
        return jnp.stack(parts, axis=0).reshape(H * B, T, D)

    for l in range(n_layer):                # static loop over layers
        vl = vecs_ref[l]                    # (6, C)

        # --- attention branch -------------------------------------------
        h = _layernorm(x2, vl[0:1], vl[1:2])
        qkv = mm(h, wqkv_ref[l])                            # (R, 3C), one lane-dense matmul
        qh = split_heads(qkv[:, 0:C])                       # (H*B, T, D), scale pre-folded
        kh = split_heads(qkv[:, C:2 * C])
        vh = split_heads(qkv[:, 2 * C:3 * C])

        att = bmm('btd,bsd->bts', qh, kh) + bias3           # (H*B, T, T)
        att = _softmax_rows(att)                            # attn dropout = identity
        yb = bmm('bts,bsd->btd', att, vh)                   # (H*B, T, D)

        # head interleave back to (R, C) once, then ONE output projection
        y = jnp.concatenate(
            [yb[hd * B:(hd + 1) * B].reshape(R, D) for hd in range(H)], axis=-1)
        x2 = x2 + mm(y, wproj_ref[l]) + vl[4:5]             # residual 1 (+ proj bias)

        # --- MLP branch ----------------------------------------------------
        h2 = _layernorm(x2, vl[2:3], vl[3:4])
        m = _gelu(mm(h2, w1_ref[l]) + b1_ref[l:l + 1, :])
        x2 = x2 + mm(m, w2_ref[l]) + vl[5:6]                # residual 2 (MLP dropout = identity)

    # --- final LayerNorm + vocab head (lane-dense V=512 output) -------------
    xf = _layernorm(x2, lnf_ref[0:1], lnf_ref[1:2])
    o_ref[...] = mm(xf, headw_ref[...])                     # (R, V)


# ---------------------------------------------------------------------------
# Wrapper around pallas_call
# ---------------------------------------------------------------------------
def tinygpt_forward(params, ids, cfg, *, mxu_dtype=jnp.float32):
    B, T = ids.shape
    C = cfg["N_EMBD"]
    V = cfg["VOCAB_SIZE"]
    L = cfg["N_LAYER"]
    H = cfg["N_HEAD"]
    assert T <= cfg["BLOCK_SIZE"], "sequence length exceeds BLOCK_SIZE"
    assert C % H == 0

    # Embedding gather + positional add done in plain JAX (glue).
    x = jnp.take(params["tok_emb"], ids, axis=0) + params["pos_emb"][:T][None, :, :]
    # embedding dropout = identity at inference
    x2 = x.reshape(B * T, C).astype(jnp.float32)            # flat (rows, C) slab

    kernel = functools.partial(
        _tinygpt_kernel, n_layer=L, n_head=H, batch=B, seq=T, mxu_dtype=mxu_dtype)

    # Grid-less pallas_call: every operand is a whole-array VMEM ref, DMA'd
    # once (no per-step BlockSpec / semaphore overhead).  Total resident
    # weights ~0.5 MiB — far under VMEM limits on all generations.
    out2 = pl.pallas_call(
        kernel,
        out_shape=jax.ShapeDtypeStruct((B * T, V), jnp.float32),
    )(
        x2,
        params["wqkv"], params["wproj"], params["vecs"],
        params["w1"], params["b1"], params["w2"],
        params["lnf"], params["head_w"],
    )
    return out2.reshape(B, T, V)


# ---------------------------------------------------------------------------
# Parameters (deterministic synthetic init, packed for the kernel)
# ---------------------------------------------------------------------------
def init_params(key, cfg):
    C, V, S = cfg["N_EMBD"], cfg["VOCAB_SIZE"], cfg["BLOCK_SIZE"]
    L, H = cfg["N_LAYER"], cfg["N_HEAD"]
    D = C // H
    std = 0.02

    def nrm(k, shape):
        return (std * jax.random.normal(k, shape)).astype(jnp.float32)

    keys = jax.random.split(key, 8)

    # Fused QKV weight (== the PyTorch (C, 3C) qkv Linear, bias=False) with the
    # 1/sqrt(head_dim) attention scale folded into the Q columns (exact rescale).
    wqkv = nrm(keys[3], (L, C, 3 * C))
    wqkv = wqkv.at[:, :, :C].multiply(1.0 / math.sqrt(D))

    # Per-layer C-sized vectors packed into one slab:
    # [ln1_g, ln1_b, ln2_g, ln2_b, proj_bias, mlp_fc2_bias]
    vecs = jnp.stack(
        [jnp.ones((L, C)), jnp.zeros((L, C)),
         jnp.ones((L, C)), jnp.zeros((L, C)),
         jnp.zeros((L, C)), jnp.zeros((L, C))],
        axis=1).astype(jnp.float32)                         # (L, 6, C)

    lnf = jnp.stack([jnp.ones((C,)), jnp.zeros((C,))], axis=0).astype(jnp.float32)  # (2, C)

    params = {
        "tok_emb": nrm(keys[0], (V, C)),
        "pos_emb": nrm(keys[1], (S, C)),
        "head_w": nrm(keys[2], (C, V)),                     # (in, out), bias=False
        "wqkv": wqkv,                                       # (L, C, 3C)
        "wproj": nrm(keys[4], (L, C, C)),                   # (in, out)
        "vecs": vecs,                                       # (L, 6, C)
        "w1": nrm(keys[5], (L, C, 4 * C)),                  # mlp fc1 (in, out)
        "b1": jnp.zeros((L, 4 * C), jnp.float32),
        "w2": nrm(keys[6], (L, 4 * C, C)),                  # mlp fc2 (in, out)
        "lnf": lnf,                                         # (2, C)
    }
    return params


# ---------------------------------------------------------------------------
if __name__ == "__main__":
    key = jax.random.PRNGKey(0)
    key, k_ids, k_params = jax.random.split(key, 3)

    B, T = 2, 8
    ids = jax.random.randint(k_ids, (B, T), 0, CONFIG["VOCAB_SIZE"], dtype=jnp.int32)
    params = init_params(k_params, CONFIG)

    fwd = jax.jit(functools.partial(tinygpt_forward, cfg=CONFIG))
    logits = fwd(params, ids)
    jax.block_until_ready(logits)

    assert logits.shape == (B, T, CONFIG["VOCAB_SIZE"])
    assert logits.dtype == jnp.float32
    assert bool(jnp.all(jnp.isfinite(logits)))
    print("KERNEL_OK")
</pallas_src>

<mosaic_0001>
module attributes {stable_mosaic.version = 11 : i64} {
  func.func @_tinygpt_kernel(%arg0: memref<16x64xf32, #tpu.memory_space<vmem>>, %arg1: memref<2x64x192xf32, #tpu.memory_space<vmem>>, %arg2: memref<2x64x64xf32, #tpu.memory_space<vmem>>, %arg3: memref<2x6x64xf32, #tpu.memory_space<vmem>>, %arg4: memref<2x64x256xf32, #tpu.memory_space<vmem>>, %arg5: memref<2x256xf32, #tpu.memory_space<vmem>>, %arg6: memref<2x256x64xf32, #tpu.memory_space<vmem>>, %arg7: memref<2x64xf32, #tpu.memory_space<vmem>>, %arg8: memref<64x512xf32, #tpu.memory_space<vmem>>, %arg9: memref<16x512xf32, #tpu.memory_space<vmem>>) attributes {dimension_semantics = [], scalar_prefetch = 0 : i64, scratch_operands = 0 : i64, tpu.core_type = #tpu.core_type<tc>} {
    %c0 = arith.constant 0 : index
    %c0_0 = arith.constant 0 : index
    %0 = vector.load %arg0[%c0, %c0_0] : memref<16x64xf32, #tpu.memory_space<vmem>>, vector<16x64xf32>
    %1 = tpu.iota {dimensions = array<i32: 0>} : vector<8x8xi32>
    %2 = tpu.iota {dimensions = array<i32: 1>} : vector<8x8xi32>
    %3 = arith.cmpi sge, %1, %2 : vector<8x8xi32>
    %cst = arith.constant 0.000000e+00 : f32
    %cst_1 = arith.constant -1.000000e+30 : f32
    %4 = vector.broadcast %cst : f32 to vector<8x8xf32>
    %5 = vector.broadcast %cst_1 : f32 to vector<8x8xf32>
    %6 = arith.select %3, %4, %5 : vector<8x8xi1>, vector<8x8xf32>
    %7 = vector.shape_cast %6 : vector<8x8xf32> to vector<1x8x8xf32>
    %8 = vector.shape_cast %7 : vector<1x8x8xf32> to vector<1x8x8xf32>
    %9 = vector.broadcast %8 : vector<1x8x8xf32> to vector<8x8x8xf32>
    %c0_2 = arith.constant 0 : index
    %c0_3 = arith.constant 0 : index
    %c0_4 = arith.constant 0 : index
    %10 = vector.load %arg3[%c0_2, %c0_3, %c0_4] : memref<2x6x64xf32, #tpu.memory_space<vmem>>, vector<1x6x64xf32>
    %11 = vector.shape_cast %10 : vector<1x6x64xf32> to vector<6x64xf32>
    %12 = vector.extract_strided_slice %11 {offsets = [0, 0], sizes = [1, 64], strides = [1, 1]} : vector<6x64xf32> to vector<1x64xf32>
    %13 = vector.extract_strided_slice %11 {offsets = [1, 0], sizes = [1, 64], strides = [1, 1]} : vector<6x64xf32> to vector<1x64xf32>
    %cst_5 = arith.constant dense<0.000000e+00> : vector<16xf32>
    %14 = vector.multi_reduction <add>, %0, %cst_5 [1] : vector<16x64xf32> to vector<16xf32>
    %15 = vector.shape_cast %14 : vector<16xf32> to vector<16x1xf32>
    %cst_6 = arith.constant 6.400000e+01 : f32
    %16 = vector.broadcast %cst_6 : f32 to vector<16x1xf32>
    %17 = arith.divf %15, %16 : vector<16x1xf32>
    %18 = vector.broadcast %17 : vector<16x1xf32> to vector<16x64xf32>
    %19 = arith.subf %0, %18 : vector<16x64xf32>
    %20 = arith.mulf %19, %19 : vector<16x64xf32>
    %cst_7 = arith.constant dense<0.000000e+00> : vector<16xf32>
    %21 = vector.multi_reduction <add>, %20, %cst_7 [1] : vector<16x64xf32> to vector<16xf32>
    %22 = vector.shape_cast %21 : vector<16xf32> to vector<16x1xf32>
    %cst_8 = arith.constant 6.400000e+01 : f32
    %23 = vector.broadcast %cst_8 : f32 to vector<16x1xf32>
    %24 = arith.divf %22, %23 : vector<16x1xf32>
    %25 = vector.broadcast %17 : vector<16x1xf32> to vector<16x64xf32>
    %26 = arith.subf %0, %25 : vector<16x64xf32>
    %cst_9 = arith.constant 9.99999974E-6 : f32
    %27 = vector.broadcast %cst_9 : f32 to vector<16x1xf32>
    %28 = arith.addf %24, %27 : vector<16x1xf32>
    %29 = math.rsqrt %28 : vector<16x1xf32>
    %30 = vector.broadcast %29 : vector<16x1xf32> to vector<16x64xf32>
    %31 = arith.mulf %26, %30 : vector<16x64xf32>
    %32 = vector.broadcast %12 : vector<1x64xf32> to vector<16x64xf32>
    %33 = arith.mulf %31, %32 : vector<16x64xf32>
    %34 = vector.broadcast %13 : vector<1x64xf32> to vector<16x64xf32>
    %35 = arith.addf %33, %34 : vector<16x64xf32>
    %c0_10 = arith.constant 0 : index
    %c0_11 = arith.constant 0 : index
    %c0_12 = arith.constant 0 : index
    %36 = vector.load %arg1[%c0_10, %c0_11, %c0_12] : memref<2x64x192xf32, #tpu.memory_space<vmem>>, vector<1x64x192xf32>
    %37 = vector.shape_cast %36 : vector<1x64x192xf32> to vector<64x192xf32>
    %cst_13 = arith.constant dense<0.000000e+00> : vector<16x192xf32>
    %38 = tpu.matmul %35, %37, %cst_13 {dimension_numbers = #tpu.dot_dimension_numbers<[1], [0], [0], [1], [0, 0, 1, 1], [], []>} : vector<16x64xf32>, vector<64x192xf32>, vector<16x192xf32> -> vector<16x192xf32>
    %39 = vector.extract_strided_slice %38 {offsets = [0, 0], sizes = [16, 64], strides = [1, 1]} : vector<16x192xf32> to vector<16x64xf32>
    %40 = vector.extract_strided_slice %39 {offsets = [0, 0], sizes = [16, 16], strides = [1, 1]} : vector<16x64xf32> to vector<16x16xf32>
    %41 = vector.extract_strided_slice %39 {offsets = [0, 16], sizes = [16, 16], strides = [1, 1]} : vector<16x64xf32> to vector<16x16xf32>
    %42 = vector.extract_strided_slice %39 {offsets = [0, 32], sizes = [16, 16], strides = [1, 1]} : vector<16x64xf32> to vector<16x16xf32>
    %43 = vector.extract_strided_slice %39 {offsets = [0, 48], sizes = [16, 16], strides = [1, 1]} : vector<16x64xf32> to vector<16x16xf32>
    %44 = vector.shape_cast %40 : vector<16x16xf32> to vector<1x16x16xf32>
    %45 = vector.shape_cast %41 : vector<16x16xf32> to vector<1x16x16xf32>
    %46 = vector.shape_cast %42 : vector<16x16xf32> to vector<1x16x16xf32>
    %47 = vector.shape_cast %43 : vector<16x16xf32> to vector<1x16x16xf32>
    %48 = tpu.concatenate %44, %45, %46, %47 in 0 : vector<1x16x16xf32>, vector<1x16x16xf32>, vector<1x16x16xf32>, vector<1x16x16xf32> -> vector<4x16x16xf32>
    %49 = vector.shape_cast %48 : vector<4x16x16xf32> to vector<8x8x16xf32>
    %50 = vector.extract_strided_slice %38 {offsets = [0, 64], sizes = [16, 64], strides = [1, 1]} : vector<16x192xf32> to vector<16x64xf32>
    %51 = vector.extract_strided_slice %50 {offsets = [0, 0], sizes = [16, 16], strides = [1, 1]} : vector<16x64xf32> to vector<16x16xf32>
    %52 = vector.extract_strided_slice %50 {offsets = [0, 16], sizes = [16, 16], strides = [1, 1]} : vector<16x64xf32> to vector<16x16xf32>
    %53 = vector.extract_strided_slice %50 {offsets = [0, 32], sizes = [16, 16], strides = [1, 1]} : vector<16x64xf32> to vector<16x16xf32>
    %54 = vector.extract_strided_slice %50 {offsets = [0, 48], sizes = [16, 16], strides = [1, 1]} : vector<16x64xf32> to vector<16x16xf32>
    %55 = vector.shape_cast %51 : vector<16x16xf32> to vector<1x16x16xf32>
    %56 = vector.shape_cast %52 : vector<16x16xf32> to vector<1x16x16xf32>
    %57 = vector.shape_cast %53 : vector<16x16xf32> to vector<1x16x16xf32>
    %58 = vector.shape_cast %54 : vector<16x16xf32> to vector<1x16x16xf32>
    %59 = tpu.concatenate %55, %56, %57, %58 in 0 : vector<1x16x16xf32>, vector<1x16x16xf32>, vector<1x16x16xf32>, vector<1x16x16xf32> -> vector<4x16x16xf32>
    %60 = vector.shape_cast %59 : vector<4x16x16xf32> to vector<8x8x16xf32>
    %61 = vector.extract_strided_slice %38 {offsets = [0, 128], sizes = [16, 64], strides = [1, 1]} : vector<16x192xf32> to vector<16x64xf32>
    %62 = vector.extract_strided_slice %61 {offsets = [0, 0], sizes = [16, 16], strides = [1, 1]} : vector<16x64xf32> to vector<16x16xf32>
    %63 = vector.extract_strided_slice %61 {offsets = [0, 16], sizes = [16, 16], strides = [1, 1]} : vector<16x64xf32> to vector<16x16xf32>
    %64 = vector.extract_strided_slice %61 {offsets = [0, 32], sizes = [16, 16], strides = [1, 1]} : vector<16x64xf32> to vector<16x16xf32>
    %65 = vector.extract_strided_slice %61 {offsets = [0, 48], sizes = [16, 16], strides = [1, 1]} : vector<16x64xf32> to vector<16x16xf32>
    %66 = vector.shape_cast %62 : vector<16x16xf32> to vector<1x16x16xf32>
    %67 = vector.shape_cast %63 : vector<16x16xf32> to vector<1x16x16xf32>
    %68 = vector.shape_cast %64 : vector<16x16xf32> to vector<1x16x16xf32>
    %69 = vector.shape_cast %65 : vector<16x16xf32> to vector<1x16x16xf32>
    %70 = tpu.concatenate %66, %67, %68, %69 in 0 : vector<1x16x16xf32>, vector<1x16x16xf32>, vector<1x16x16xf32>, vector<1x16x16xf32> -> vector<4x16x16xf32>
    %71 = vector.shape_cast %70 : vector<4x16x16xf32> to vector<8x8x16xf32>
    "tpu.trace_start"() <{level = 10 : i32, message = "btd,bsd->bts"}> : () -> ()
    %cst_14 = arith.constant dense<0.000000e+00> : vector<8x8x8xf32>
    %72 = tpu.matmul %49, %60, %cst_14 {dimension_numbers = #tpu.dot_dimension_numbers<[2], [2], [1], [1], [0, 0, 0, 1, 1, 1], [0], [0]>} : vector<8x8x16xf32>, vector<8x8x16xf32>, vector<8x8x8xf32> -> vector<8x8x8xf32>
    "tpu.trace_stop"() : () -> ()
    %73 = arith.addf %72, %9 : vector<8x8x8xf32>
    %cst_15 = arith.constant dense<0xFF800000> : vector<8x8xf32>
    %74 = vector.multi_reduction <maximumf>, %73, %cst_15 [2] : vector<8x8x8xf32> to vector<8x8xf32>
    %75 = vector.shape_cast %74 : vector<8x8xf32> to vector<8x8x1xf32>
    %76 = vector.broadcast %75 : vector<8x8x1xf32> to vector<8x8x8xf32>
    %77 = arith.subf %73, %76 : vector<8x8x8xf32>
    %78 = math.exp %77 : vector<8x8x8xf32>
    %cst_16 = arith.constant dense<0.000000e+00> : vector<8x8xf32>
    %79 = vector.multi_reduction <add>, %78, %cst_16 [2] : vector<8x8x8xf32> to vector<8x8xf32>
    %80 = vector.shape_cast %79 : vector<8x8xf32> to vector<8x8x1xf32>
    %81 = vector.broadcast %80 : vector<8x8x1xf32> to vector<8x8x8xf32>
    %82 = arith.divf %78, %81 : vector<8x8x8xf32>
    "tpu.trace_start"() <{level = 10 : i32, message = "bts,bsd->btd"}> : () -> ()
    %cst_17 = arith.constant dense<0.000000e+00> : vector<8x8x16xf32>
    %83 = tpu.matmul %82, %71, %cst_17 {dimension_numbers = #tpu.dot_dimension_numbers<[2], [1], [1], [2], [0, 0, 0, 1, 1, 2], [0], [0]>} : vector<8x8x8xf32>, vector<8x8x16xf32>, vector<8x8x16xf32> -> vector<8x8x16xf32>
    "tpu.trace_stop"() : () -> ()
    %84 = vector.extract_strided_slice %83 {offsets = [0, 0, 0], sizes = [2, 8, 16], strides = [1, 1, 1]} : vector<8x8x16xf32> to vector<2x8x16xf32>
    %85 = vector.shape_cast %84 : vector<2x8x16xf32> to vector<16x16xf32>
    %86 = vector.extract_strided_slice %83 {offsets = [2, 0, 0], sizes = [2, 8, 16], strides = [1, 1, 1]} : vector<8x8x16xf32> to vector<2x8x16xf32>
    %87 = vector.shape_cast %86 : vector<2x8x16xf32> to vector<16x16xf32>
    %88 = vector.extract_strided_slice %83 {offsets = [4, 0, 0], sizes = [2, 8, 16], strides = [1, 1, 1]} : vector<8x8x16xf32> to vector<2x8x16xf32>
    %89 = vector.shape_cast %88 : vector<2x8x16xf32> to vector<16x16xf32>
    %90 = vector.extract_strided_slice %83 {offsets = [6, 0, 0], sizes = [2, 8, 16], strides = [1, 1, 1]} : vector<8x8x16xf32> to vector<2x8x16xf32>
    %91 = vector.shape_cast %90 : vector<2x8x16xf32> to vector<16x16xf32>
    %92 = tpu.concatenate %85, %87, %89, %91 in 1 : vector<16x16xf32>, vector<16x16xf32>, vector<16x16xf32>, vector<16x16xf32> -> vector<16x64xf32>
    %c0_18 = arith.constant 0 : index
    %c0_19 = arith.constant 0 : index
    %c0_20 = arith.constant 0 : index
    %93 = vector.load %arg2[%c0_18, %c0_19, %c0_20] : memref<2x64x64xf32, #tpu.memory_space<vmem>>, vector<1x64x64xf32>
    %94 = vector.shape_cast %93 : vector<1x64x64xf32> to vector<64x64xf32>
    %cst_21 = arith.constant dense<0.000000e+00> : vector<16x64xf32>
    %95 = tpu.matmul %92, %94, %cst_21 {dimension_numbers = #tpu.dot_dimension_numbers<[1], [0], [0], [1], [0, 0, 1, 1], [], []>} : vector<16x64xf32>, vector<64x64xf32>, vector<16x64xf32> -> vector<16x64xf32>
    %96 = arith.addf %0, %95 : vector<16x64xf32>
    %97 = vector.extract_strided_slice %11 {offsets = [4, 0], sizes = [1, 64], strides = [1, 1]} : vector<6x64xf32> to vector<1x64xf32>
    %98 = vector.broadcast %97 : vector<1x64xf32> to vector<16x64xf32>
    %99 = arith.addf %96, %98 : vector<16x64xf32>
    %100 = vector.extract_strided_slice %11 {offsets = [2, 0], sizes = [1, 64], strides = [1, 1]} : vector<6x64xf32> to vector<1x64xf32>
    %101 = vector.extract_strided_slice %11 {offsets = [3, 0], sizes = [1, 64], strides = [1, 1]} : vector<6x64xf32> to vector<1x64xf32>
    %cst_22 = arith.constant dense<0.000000e+00> : vector<16xf32>
    %102 = vector.multi_reduction <add>, %99, %cst_22 [1] : vector<16x64xf32> to vector<16xf32>
    %103 = vector.shape_cast %102 : vector<16xf32> to vector<16x1xf32>
    %cst_23 = arith.constant 6.400000e+01 : f32
    %104 = vector.broadcast %cst_23 : f32 to vector<16x1xf32>
    %105 = arith.divf %103, %104 : vector<16x1xf32>
    %106 = vector.broadcast %105 : vector<16x1xf32> to vector<16x64xf32>
    %107 = arith.subf %99, %106 : vector<16x64xf32>
    %108 = arith.mulf %107, %107 : vector<16x64xf32>
    %cst_24 = arith.constant dense<0.000000e+00> : vector<16xf32>
    %109 = vector.multi_reduction <add>, %108, %cst_24 [1] : vector<16x64xf32> to vector<16xf32>
    %110 = vector.shape_cast %109 : vector<16xf32> to vector<16x1xf32>
    %cst_25 = arith.constant 6.400000e+01 : f32
    %111 = vector.broadcast %cst_25 : f32 to vector<16x1xf32>
    %112 = arith.divf %110, %111 : vector<16x1xf32>
    %113 = vector.broadcast %105 : vector<16x1xf32> to vector<16x64xf32>
    %114 = arith.subf %99, %113 : vector<16x64xf32>
    %cst_26 = arith.constant 9.99999974E-6 : f32
    %115 = vector.broadcast %cst_26 : f32 to vector<16x1xf32>
    %116 = arith.addf %112, %115 : vector<16x1xf32>
    %117 = math.rsqrt %116 : vector<16x1xf32>
    %118 = vector.broadcast %117 : vector<16x1xf32> to vector<16x64xf32>
    %119 = arith.mulf %114, %118 : vector<16x64xf32>
    %120 = vector.broadcast %100 : vector<1x64xf32> to vector<16x64xf32>
    %121 = arith.mulf %119, %120 : vector<16x64xf32>
    %122 = vector.broadcast %101 : vector<1x64xf32> to vector<16x64xf32>
    %123 = arith.addf %121, %122 : vector<16x64xf32>
    %c0_27 = arith.constant 0 : index
    %c0_28 = arith.constant 0 : index
    %c0_29 = arith.constant 0 : index
    %124 = vector.load %arg4[%c0_27, %c0_28, %c0_29] : memref<2x64x256xf32, #tpu.memory_space<vmem>>, vector<1x64x256xf32>
    %125 = vector.shape_cast %124 : vector<1x64x256xf32> to vector<64x256xf32>
    %cst_30 = arith.constant dense<0.000000e+00> : vector<16x256xf32>
    %126 = tpu.matmul %123, %125, %cst_30 {dimension_numbers = #tpu.dot_dimension_numbers<[1], [0], [0], [1], [0, 0, 1, 1], [], []>} : vector<16x64xf32>, vector<64x256xf32>, vector<16x256xf32> -> vector<16x256xf32>
    %c0_31 = arith.constant 0 : index
    %c0_32 = arith.constant 0 : index
    %127 = vector.load %arg5[%c0_31, %c0_32] : memref<2x256xf32, #tpu.memory_space<vmem>>, vector<1x256xf32>
    %128 = vector.broadcast %127 : vector<1x256xf32> to vector<16x256xf32>
    %129 = arith.addf %126, %128 : vector<16x256xf32>
    %cst_33 = arith.constant 5.000000e-01 : f32
    %130 = vector.broadcast %cst_33 : f32 to vector<16x256xf32>
    %131 = arith.mulf %130, %129 : vector<16x256xf32>
    %cst_34 = arith.constant 0.707106769 : f32
    %132 = vector.broadcast %cst_34 : f32 to vector<16x256xf32>
    %133 = arith.mulf %129, %132 : vector<16x256xf32>
    %cst_35 = arith.constant 0.000000e+00 : f32
    %134 = vector.broadcast %cst_35 : f32 to vector<16x256xf32>
    %135 = arith.cmpf oge, %133, %134 : vector<16x256xf32>
    %cst_36 = arith.constant 1.000000e+00 : f32
    %cst_37 = arith.constant -1.000000e+00 : f32
    %136 = vector.broadcast %cst_36 : f32 to vector<16x256xf32>
    %137 = vector.broadcast %cst_37 : f32 to vector<16x256xf32>
    %138 = arith.select %135, %136, %137 : vector<16x256xi1>, vector<16x256xf32>
    %139 = math.absf %133 : vector<16x256xf32>
    %cst_38 = arith.constant 0.327591091 : f32
    %140 = vector.broadcast %cst_38 : f32 to vector<16x256xf32>
    %141 = arith.mulf %140, %139 : vector<16x256xf32>
    %cst_39 = arith.constant 1.000000e+00 : f32
    %142 = vector.broadcast %cst_39 : f32 to vector<16x256xf32>
    %143 = arith.addf %142, %141 : vector<16x256xf32>
    %cst_40 = arith.constant 1.000000e+00 : f32
    %144 = vector.broadcast %cst_40 : f32 to vector<16x256xf32>
    %145 = arith.divf %144, %143 : vector<16x256xf32>
    %cst_41 = arith.constant 1.06140542 : f32
    %146 = vector.broadcast %cst_41 : f32 to vector<16x256xf32>
    %147 = arith.mulf %146, %145 : vector<16x256xf32>
    %cst_42 = arith.constant -1.45315206 : f32
    %148 = vector.broadcast %cst_42 : f32 to vector<16x256xf32>
    %149 = arith.addf %147, %148 : vector<16x256xf32>
    %150 = arith.mulf %149, %145 : vector<16x256xf32>
    %cst_43 = arith.constant 1.42141378 : f32
    %151 = vector.broadcast %cst_43 : f32 to vector<16x256xf32>
    %152 = arith.addf %150, %151 : vector<16x256xf32>
    %153 = arith.mulf %152, %145 : vector<16x256xf32>
    %cst_44 = arith.constant -0.284496725 : f32
    %154 = vector.broadcast %cst_44 : f32 to vector<16x256xf32>
    %155 = arith.addf %153, %154 : vector<16x256xf32>
    %156 = arith.mulf %155, %145 : vector<16x256xf32>
    %cst_45 = arith.constant 0.254829586 : f32
    %157 = vector.broadcast %cst_45 : f32 to vector<16x256xf32>
    %158 = arith.addf %156, %157 : vector<16x256xf32>
    %159 = arith.mulf %158, %145 : vector<16x256xf32>
    %cst_46 = arith.constant 0.000000e+00 : f32
    %160 = vector.broadcast %cst_46 : f32 to vector<16x256xf32>
    %161 = arith.subf %160, %139 : vector<16x256xf32>
    %162 = arith.mulf %161, %139 : vector<16x256xf32>
    %163 = math.exp %162 : vector<16x256xf32>
    %164 = arith.mulf %159, %163 : vector<16x256xf32>
    %cst_47 = arith.constant 1.000000e+00 : f32
    %165 = vector.broadcast %cst_47 : f32 to vector<16x256xf32>
    %166 = arith.subf %165, %164 : vector<16x256xf32>
    %167 = arith.mulf %138, %166 : vector<16x256xf32>
    %cst_48 = arith.constant 1.000000e+00 : f32
    %168 = vector.broadcast %cst_48 : f32 to vector<16x256xf32>
    %169 = arith.addf %168, %167 : vector<16x256xf32>
    %170 = arith.mulf %131, %169 : vector<16x256xf32>
    %c0_49 = arith.constant 0 : index
    %c0_50 = arith.constant 0 : index
    %c0_51 = arith.constant 0 : index
    %171 = vector.load %arg6[%c0_49, %c0_50, %c0_51] : memref<2x256x64xf32, #tpu.memory_space<vmem>>, vector<1x256x64xf32>
    %172 = vector.shape_cast %171 : vector<1x256x64xf32> to vector<256x64xf32>
    %cst_52 = arith.constant dense<0.000000e+00> : vector<16x64xf32>
    %173 = tpu.matmul %170, %172, %cst_52 {dimension_numbers = #tpu.dot_dimension_numbers<[1], [0], [0], [1], [0, 0, 1, 1], [], []>} : vector<16x256xf32>, vector<256x64xf32>, vector<16x64xf32> -> vector<16x64xf32>
    %174 = arith.addf %99, %173 : vector<16x64xf32>
    %175 = vector.extract_strided_slice %11 {offsets = [5, 0], sizes = [1, 64], strides = [1, 1]} : vector<6x64xf32> to vector<1x64xf32>
    %176 = vector.broadcast %175 : vector<1x64xf32> to vector<16x64xf32>
    %177 = arith.addf %174, %176 : vector<16x64xf32>
    %c1 = arith.constant 1 : index
    %c0_53 = arith.constant 0 : index
    %c0_54 = arith.constant 0 : index
    %178 = vector.load %arg3[%c1, %c0_53, %c0_54] : memref<2x6x64xf32, #tpu.memory_space<vmem>>, vector<1x6x64xf32>
    %179 = vector.shape_cast %178 : vector<1x6x64xf32> to vector<6x64xf32>
    %180 = vector.extract_strided_slice %179 {offsets = [0, 0], sizes = [1, 64], strides = [1, 1]} : vector<6x64xf32> to vector<1x64xf32>
    %181 = vector.extract_strided_slice %179 {offsets = [1, 0], sizes = [1, 64], strides = [1, 1]} : vector<6x64xf32> to vector<1x64xf32>
    %cst_55 = arith.constant dense<0.000000e+00> : vector<16xf32>
    %182 = vector.multi_reduction <add>, %177, %cst_55 [1] : vector<16x64xf32> to vector<16xf32>
    %183 = vector.shape_cast %182 : vector<16xf32> to vector<16x1xf32>
    %cst_56 = arith.constant 6.400000e+01 : f32
    %184 = vector.broadcast %cst_56 : f32 to vector<16x1xf32>
    %185 = arith.divf %183, %184 : vector<16x1xf32>
    %186 = vector.broadcast %185 : vector<16x1xf32> to vector<16x64xf32>
    %187 = arith.subf %177, %186 : vector<16x64xf32>
    %188 = arith.mulf %187, %187 : vector<16x64xf32>
    %cst_57 = arith.constant dense<0.000000e+00> : vector<16xf32>
    %189 = vector.multi_reduction <add>, %188, %cst_57 [1] : vector<16x64xf32> to vector<16xf32>
    %190 = vector.shape_cast %189 : vector<16xf32> to vector<16x1xf32>
    %cst_58 = arith.constant 6.400000e+01 : f32
    %191 = vector.broadcast %cst_58 : f32 to vector<16x1xf32>
    %192 = arith.divf %190, %191 : vector<16x1xf32>
    %193 = vector.broadcast %185 : vector<16x1xf32> to vector<16x64xf32>
    %194 = arith.subf %177, %193 : vector<16x64xf32>
    %cst_59 = arith.constant 9.99999974E-6 : f32
    %195 = vector.broadcast %cst_59 : f32 to vector<16x1xf32>
    %196 = arith.addf %192, %195 : vector<16x1xf32>
    %197 = math.rsqrt %196 : vector<16x1xf32>
    %198 = vector.broadcast %197 : vector<16x1xf32> to vector<16x64xf32>
    %199 = arith.mulf %194, %198 : vector<16x64xf32>
    %200 = vector.broadcast %180 : vector<1x64xf32> to vector<16x64xf32>
    %201 = arith.mulf %199, %200 : vector<16x64xf32>
    %202 = vector.broadcast %181 : vector<1x64xf32> to vector<16x64xf32>
    %203 = arith.addf %201, %202 : vector<16x64xf32>
    %c1_60 = arith.constant 1 : index
    %c0_61 = arith.constant 0 : index
    %c0_62 = arith.constant 0 : index
    %204 = vector.load %arg1[%c1_60, %c0_61, %c0_62] : memref<2x64x192xf32, #tpu.memory_space<vmem>>, vector<1x64x192xf32>
    %205 = vector.shape_cast %204 : vector<1x64x192xf32> to vector<64x192xf32>
    %cst_63 = arith.constant dense<0.000000e+00> : vector<16x192xf32>
    %206 = tpu.matmul %203, %205, %cst_63 {dimension_numbers = #tpu.dot_dimension_numbers<[1], [0], [0], [1], [0, 0, 1, 1], [], []>} : vector<16x64xf32>, vector<64x192xf32>, vector<16x192xf32> -> vector<16x192xf32>
    %207 = vector.extract_strided_slice %206 {offsets = [0, 0], sizes = [16, 64], strides = [1, 1]} : vector<16x192xf32> to vector<16x64xf32>
    %208 = vector.extract_strided_slice %207 {offsets = [0, 0], sizes = [16, 16], strides = [1, 1]} : vector<16x64xf32> to vector<16x16xf32>
    %209 = vector.extract_strided_slice %207 {offsets = [0, 16], sizes = [16, 16], strides = [1, 1]} : vector<16x64xf32> to vector<16x16xf32>
    %210 = vector.extract_strided_slice %207 {offsets = [0, 32], sizes = [16, 16], strides = [1, 1]} : vector<16x64xf32> to vector<16x16xf32>
    %211 = vector.extract_strided_slice %207 {offsets = [0, 48], sizes = [16, 16], strides = [1, 1]} : vector<16x64xf32> to vector<16x16xf32>
    %212 = vector.shape_cast %208 : vector<16x16xf32> to vector<1x16x16xf32>
    %213 = vector.shape_cast %209 : vector<16x16xf32> to vector<1x16x16xf32>
    %214 = vector.shape_cast %210 : vector<16x16xf32> to vector<1x16x16xf32>
    %215 = vector.shape_cast %211 : vector<16x16xf32> to vector<1x16x16xf32>
    %216 = tpu.concatenate %212, %213, %214, %215 in 0 : vector<1x16x16xf32>, vector<1x16x16xf32>, vector<1x16x16xf32>, vector<1x16x16xf32> -> vector<4x16x16xf32>
    %217 = vector.shape_cast %216 : vector<4x16x16xf32> to vector<8x8x16xf32>
    %218 = vector.extract_strided_slice %206 {offsets = [0, 64], sizes = [16, 64], strides = [1, 1]} : vector<16x192xf32> to vector<16x64xf32>
    %219 = vector.extract_strided_slice %218 {offsets = [0, 0], sizes = [16, 16], strides = [1, 1]} : vector<16x64xf32> to vector<16x16xf32>
    %220 = vector.extract_strided_slice %218 {offsets = [0, 16], sizes = [16, 16], strides = [1, 1]} : vector<16x64xf32> to vector<16x16xf32>
    %221 = vector.extract_strided_slice %218 {offsets = [0, 32], sizes = [16, 16], strides = [1, 1]} : vector<16x64xf32> to vector<16x16xf32>
    %222 = vector.extract_strided_slice %218 {offsets = [0, 48], sizes = [16, 16], strides = [1, 1]} : vector<16x64xf32> to vector<16x16xf32>
    %223 = vector.shape_cast %219 : vector<16x16xf32> to vector<1x16x16xf32>
    %224 = vector.shape_cast %220 : vector<16x16xf32> to vector<1x16x16xf32>
    %225 = vector.shape_cast %221 : vector<16x16xf32> to vector<1x16x16xf32>
    %226 = vector.shape_cast %222 : vector<16x16xf32> to vector<1x16x16xf32>
    %227 = tpu.concatenate %223, %224, %225, %226 in 0 : vector<1x16x16xf32>, vector<1x16x16xf32>, vector<1x16x16xf32>, vector<1x16x16xf32> -> vector<4x16x16xf32>
    %228 = vector.shape_cast %227 : vector<4x16x16xf32> to vector<8x8x16xf32>
    %229 = vector.extract_strided_slice %206 {offsets = [0, 128], sizes = [16, 64], strides = [1, 1]} : vector<16x192xf32> to vector<16x64xf32>
    %230 = vector.extract_strided_slice %229 {offsets = [0, 0], sizes = [16, 16], strides = [1, 1]} : vector<16x64xf32> to vector<16x16xf32>
    %231 = vector.extract_strided_slice %229 {offsets = [0, 16], sizes = [16, 16], strides = [1, 1]} : vector<16x64xf32> to vector<16x16xf32>
    %232 = vector.extract_strided_slice %229 {offsets = [0, 32], sizes = [16, 16], strides = [1, 1]} : vector<16x64xf32> to vector<16x16xf32>
    %233 = vector.extract_strided_slice %229 {offsets = [0, 48], sizes = [16, 16], strides = [1, 1]} : vector<16x64xf32> to vector<16x16xf32>
    %234 = vector.shape_cast %230 : vector<16x16xf32> to vector<1x16x16xf32>
    %235 = vector.shape_cast %231 : vector<16x16xf32> to vector<1x16x16xf32>
    %236 = vector.shape_cast %232 : vector<16x16xf32> to vector<1x16x16xf32>
    %237 = vector.shape_cast %233 : vector<16x16xf32> to vector<1x16x16xf32>
    %238 = tpu.concatenate %234, %235, %236, %237 in 0 : vector<1x16x16xf32>, vector<1x16x16xf32>, vector<1x16x16xf32>, vector<1x16x16xf32> -> vector<4x16x16xf32>
    %239 = vector.shape_cast %238 : vector<4x16x16xf32> to vector<8x8x16xf32>
    "tpu.trace_start"() <{level = 10 : i32, message = "btd,bsd->bts"}> : () -> ()
    %cst_64 = arith.constant dense<0.000000e+00> : vector<8x8x8xf32>
    %240 = tpu.matmul %217, %228, %cst_64 {dimension_numbers = #tpu.dot_dimension_numbers<[2], [2], [1], [1], [0, 0, 0, 1, 1, 1], [0], [0]>} : vector<8x8x16xf32>, vector<8x8x16xf32>, vector<8x8x8xf32> -> vector<8x8x8xf32>
    "tpu.trace_stop"() : () -> ()
    %241 = arith.addf %240, %9 : vector<8x8x8xf32>
    %cst_65 = arith.constant dense<0xFF800000> : vector<8x8xf32>
    %242 = vector.multi_reduction <maximumf>, %241, %cst_65 [2] : vector<8x8x8xf32> to vector<8x8xf32>
    %243 = vector.shape_cast %242 : vector<8x8xf32> to vector<8x8x1xf32>
    %244 = vector.broadcast %243 : vector<8x8x1xf32> to vector<8x8x8xf32>
    %245 = arith.subf %241, %244 : vector<8x8x8xf32>
    %246 = math.exp %245 : vector<8x8x8xf32>
    %cst_66 = arith.constant dense<0.000000e+00> : vector<8x8xf32>
    %247 = vector.multi_reduction <add>, %246, %cst_66 [2] : vector<8x8x8xf32> to vector<8x8xf32>
    %248 = vector.shape_cast %247 : vector<8x8xf32> to vector<8x8x1xf32>
    %249 = vector.broadcast %248 : vector<8x8x1xf32> to vector<8x8x8xf32>
    %250 = arith.divf %246, %249 : vector<8x8x8xf32>
    "tpu.trace_start"() <{level = 10 : i32, message = "bts,bsd->btd"}> : () -> ()
    %cst_67 = arith.constant dense<0.000000e+00> : vector<8x8x16xf32>
    %251 = tpu.matmul %250, %239, %cst_67 {dimension_numbers = #tpu.dot_dimension_numbers<[2], [1], [1], [2], [0, 0, 0, 1, 1, 2], [0], [0]>} : vector<8x8x8xf32>, vector<8x8x16xf32>, vector<8x8x16xf32> -> vector<8x8x16xf32>
    "tpu.trace_stop"() : () -> ()
    %252 = vector.extract_strided_slice %251 {offsets = [0, 0, 0], sizes = [2, 8, 16], strides = [1, 1, 1]} : vector<8x8x16xf32> to vector<2x8x16xf32>
    %253 = vector.shape_cast %252 : vector<2x8x16xf32> to vector<16x16xf32>
    %254 = vector.extract_strided_slice %251 {offsets = [2, 0, 0], sizes = [2, 8, 16], strides = [1, 1, 1]} : vector<8x8x16xf32> to vector<2x8x16xf32>
    %255 = vector.shape_cast %254 : vector<2x8x16xf32> to vector<16x16xf32>
    %256 = vector.extract_strided_slice %251 {offsets = [4, 0, 0], sizes = [2, 8, 16], strides = [1, 1, 1]} : vector<8x8x16xf32> to vector<2x8x16xf32>
    %257 = vector.shape_cast %256 : vector<2x8x16xf32> to vector<16x16xf32>
    %258 = vector.extract_strided_slice %251 {offsets = [6, 0, 0], sizes = [2, 8, 16], strides = [1, 1, 1]} : vector<8x8x16xf32> to vector<2x8x16xf32>
    %259 = vector.shape_cast %258 : vector<2x8x16xf32> to vector<16x16xf32>
    %260 = tpu.concatenate %253, %255, %257, %259 in 1 : vector<16x16xf32>, vector<16x16xf32>, vector<16x16xf32>, vector<16x16xf32> -> vector<16x64xf32>
    %c1_68 = arith.constant 1 : index
    %c0_69 = arith.constant 0 : index
    %c0_70 = arith.constant 0 : index
    %261 = vector.load %arg2[%c1_68, %c0_69, %c0_70] : memref<2x64x64xf32, #tpu.memory_space<vmem>>, vector<1x64x64xf32>
    %262 = vector.shape_cast %261 : vector<1x64x64xf32> to vector<64x64xf32>
    %cst_71 = arith.constant dense<0.000000e+00> : vector<16x64xf32>
    %263 = tpu.matmul %260, %262, %cst_71 {dimension_numbers = #tpu.dot_dimension_numbers<[1], [0], [0], [1], [0, 0, 1, 1], [], []>} : vector<16x64xf32>, vector<64x64xf32>, vector<16x64xf32> -> vector<16x64xf32>
    %264 = arith.addf %177, %263 : vector<16x64xf32>
    %265 = vector.extract_strided_slice %179 {offsets = [4, 0], sizes = [1, 64], strides = [1, 1]} : vector<6x64xf32> to vector<1x64xf32>
    %266 = vector.broadcast %265 : vector<1x64xf32> to vector<16x64xf32>
    %267 = arith.addf %264, %266 : vector<16x64xf32>
    %268 = vector.extract_strided_slice %179 {offsets = [2, 0], sizes = [1, 64], strides = [1, 1]} : vector<6x64xf32> to vector<1x64xf32>
    %269 = vector.extract_strided_slice %179 {offsets = [3, 0], sizes = [1, 64], strides = [1, 1]} : vector<6x64xf32> to vector<1x64xf32>
    %cst_72 = arith.constant dense<0.000000e+00> : vector<16xf32>
    %270 = vector.multi_reduction <add>, %267, %cst_72 [1] : vector<16x64xf32> to vector<16xf32>
    %271 = vector.shape_cast %270 : vector<16xf32> to vector<16x1xf32>
    %cst_73 = arith.constant 6.400000e+01 : f32
    %272 = vector.broadcast %cst_73 : f32 to vector<16x1xf32>
    %273 = arith.divf %271, %272 : vector<16x1xf32>
    %274 = vector.broadcast %273 : vector<16x1xf32> to vector<16x64xf32>
    %275 = arith.subf %267, %274 : vector<16x64xf32>
    %276 = arith.mulf %275, %275 : vector<16x64xf32>
    %cst_74 = arith.constant dense<0.000000e+00> : vector<16xf32>
    %277 = vector.multi_reduction <add>, %276, %cst_74 [1] : vector<16x64xf32> to vector<16xf32>
    %278 = vector.shape_cast %277 : vector<16xf32> to vector<16x1xf32>
    %cst_75 = arith.constant 6.400000e+01 : f32
    %279 = vector.broadcast %cst_75 : f32 to vector<16x1xf32>
    %280 = arith.divf %278, %279 : vector<16x1xf32>
    %281 = vector.broadcast %273 : vector<16x1xf32> to vector<16x64xf32>
    %282 = arith.subf %267, %281 : vector<16x64xf32>
    %cst_76 = arith.constant 9.99999974E-6 : f32
    %283 = vector.broadcast %cst_76 : f32 to vector<16x1xf32>
    %284 = arith.addf %280, %283 : vector<16x1xf32>
    %285 = math.rsqrt %284 : vector<16x1xf32>
    %286 = vector.broadcast %285 : vector<16x1xf32> to vector<16x64xf32>
    %287 = arith.mulf %282, %286 : vector<16x64xf32>
    %288 = vector.broadcast %268 : vector<1x64xf32> to vector<16x64xf32>
    %289 = arith.mulf %287, %288 : vector<16x64xf32>
    %290 = vector.broadcast %269 : vector<1x64xf32> to vector<16x64xf32>
    %291 = arith.addf %289, %290 : vector<16x64xf32>
    %c1_77 = arith.constant 1 : index
    %c0_78 = arith.constant 0 : index
    %c0_79 = arith.constant 0 : index
    %292 = vector.load %arg4[%c1_77, %c0_78, %c0_79] : memref<2x64x256xf32, #tpu.memory_space<vmem>>, vector<1x64x256xf32>
    %293 = vector.shape_cast %292 : vector<1x64x256xf32> to vector<64x256xf32>
    %cst_80 = arith.constant dense<0.000000e+00> : vector<16x256xf32>
    %294 = tpu.matmul %291, %293, %cst_80 {dimension_numbers = #tpu.dot_dimension_numbers<[1], [0], [0], [1], [0, 0, 1, 1], [], []>} : vector<16x64xf32>, vector<64x256xf32>, vector<16x256xf32> -> vector<16x256xf32>
    %c1_81 = arith.constant 1 : index
    %c0_82 = arith.constant 0 : index
    %295 = vector.load %arg5[%c1_81, %c0_82] : memref<2x256xf32, #tpu.memory_space<vmem>>, vector<1x256xf32>
    %296 = vector.broadcast %295 : vector<1x256xf32> to vector<16x256xf32>
    %297 = arith.addf %294, %296 : vector<16x256xf32>
    %cst_83 = arith.constant 5.000000e-01 : f32
    %298 = vector.broadcast %cst_83 : f32 to vector<16x256xf32>
    %299 = arith.mulf %298, %297 : vector<16x256xf32>
    %cst_84 = arith.constant 0.707106769 : f32
    %300 = vector.broadcast %cst_84 : f32 to vector<16x256xf32>
    %301 = arith.mulf %297, %300 : vector<16x256xf32>
    %cst_85 = arith.constant 0.000000e+00 : f32
    %302 = vector.broadcast %cst_85 : f32 to vector<16x256xf32>
    %303 = arith.cmpf oge, %301, %302 : vector<16x256xf32>
    %cst_86 = arith.constant 1.000000e+00 : f32
    %cst_87 = arith.constant -1.000000e+00 : f32
    %304 = vector.broadcast %cst_86 : f32 to vector<16x256xf32>
    %305 = vector.broadcast %cst_87 : f32 to vector<16x256xf32>
    %306 = arith.select %303, %304, %305 : vector<16x256xi1>, vector<16x256xf32>
    %307 = math.absf %301 : vector<16x256xf32>
    %cst_88 = arith.constant 0.327591091 : f32
    %308 = vector.broadcast %cst_88 : f32 to vector<16x256xf32>
    %309 = arith.mulf %308, %307 : vector<16x256xf32>
    %cst_89 = arith.constant 1.000000e+00 : f32
    %310 = vector.broadcast %cst_89 : f32 to vector<16x256xf32>
    %311 = arith.addf %310, %309 : vector<16x256xf32>
    %cst_90 = arith.constant 1.000000e+00 : f32
    %312 = vector.broadcast %cst_90 : f32 to vector<16x256xf32>
    %313 = arith.divf %312, %311 : vector<16x256xf32>
    %cst_91 = arith.constant 1.06140542 : f32
    %314 = vector.broadcast %cst_91 : f32 to vector<16x256xf32>
    %315 = arith.mulf %314, %313 : vector<16x256xf32>
    %cst_92 = arith.constant -1.45315206 : f32
    %316 = vector.broadcast %cst_92 : f32 to vector<16x256xf32>
    %317 = arith.addf %315, %316 : vector<16x256xf32>
    %318 = arith.mulf %317, %313 : vector<16x256xf32>
    %cst_93 = arith.constant 1.42141378 : f32
    %319 = vector.broadcast %cst_93 : f32 to vector<16x256xf32>
    %320 = arith.addf %318, %319 : vector<16x256xf32>
    %321 = arith.mulf %320, %313 : vector<16x256xf32>
    %cst_94 = arith.constant -0.284496725 : f32
    %322 = vector.broadcast %cst_94 : f32 to vector<16x256xf32>
    %323 = arith.addf %321, %322 : vector<16x256xf32>
    %324 = arith.mulf %323, %313 : vector<16x256xf32>
    %cst_95 = arith.constant 0.254829586 : f32
    %325 = vector.broadcast %cst_95 : f32 to vector<16x256xf32>
    %326 = arith.addf %324, %325 : vector<16x256xf32>
    %327 = arith.mulf %326, %313 : vector<16x256xf32>
    %cst_96 = arith.constant 0.000000e+00 : f32
    %328 = vector.broadcast %cst_96 : f32 to vector<16x256xf32>
    %329 = arith.subf %328, %307 : vector<16x256xf32>
    %330 = arith.mulf %329, %307 : vector<16x256xf32>
    %331 = math.exp %330 : vector<16x256xf32>
    %332 = arith.mulf %327, %331 : vector<16x256xf32>
    %cst_97 = arith.constant 1.000000e+00 : f32
    %333 = vector.broadcast %cst_97 : f32 to vector<16x256xf32>
    %334 = arith.subf %333, %332 : vector<16x256xf32>
    %335 = arith.mulf %306, %334 : vector<16x256xf32>
    %cst_98 = arith.constant 1.000000e+00 : f32
    %336 = vector.broadcast %cst_98 : f32 to vector<16x256xf32>
    %337 = arith.addf %336, %335 : vector<16x256xf32>
    %338 = arith.mulf %299, %337 : vector<16x256xf32>
    %c1_99 = arith.constant 1 : index
    %c0_100 = arith.constant 0 : index
    %c0_101 = arith.constant 0 : index
    %339 = vector.load %arg6[%c1_99, %c0_100, %c0_101] : memref<2x256x64xf32, #tpu.memory_space<vmem>>, vector<1x256x64xf32>
    %340 = vector.shape_cast %339 : vector<1x256x64xf32> to vector<256x64xf32>
    %cst_102 = arith.constant dense<0.000000e+00> : vector<16x64xf32>
    %341 = tpu.matmul %338, %340, %cst_102 {dimension_numbers = #tpu.dot_dimension_numbers<[1], [0], [0], [1], [0, 0, 1, 1], [], []>} : vector<16x256xf32>, vector<256x64xf32>, vector<16x64xf32> -> vector<16x64xf32>
    %342 = arith.addf %267, %341 : vector<16x64xf32>
    %343 = vector.extract_strided_slice %179 {offsets = [5, 0], sizes = [1, 64], strides = [1, 1]} : vector<6x64xf32> to vector<1x64xf32>
    %344 = vector.broadcast %343 : vector<1x64xf32> to vector<16x64xf32>
    %345 = arith.addf %342, %344 : vector<16x64xf32>
    %c0_103 = arith.constant 0 : index
    %c0_104 = arith.constant 0 : index
    %346 = vector.load %arg7[%c0_103, %c0_104] : memref<2x64xf32, #tpu.memory_space<vmem>>, vector<1x64xf32>
    %c1_105 = arith.constant 1 : index
    %c0_106 = arith.constant 0 : index
    %347 = vector.load %arg7[%c1_105, %c0_106] : memref<2x64xf32, #tpu.memory_space<vmem>>, vector<1x64xf32>
    %cst_107 = arith.constant dense<0.000000e+00> : vector<16xf32>
    %348 = vector.multi_reduction <add>, %345, %cst_107 [1] : vector<16x64xf32> to vector<16xf32>
    %349 = vector.shape_cast %348 : vector<16xf32> to vector<16x1xf32>
    %cst_108 = arith.constant 6.400000e+01 : f32
    %350 = vector.broadcast %cst_108 : f32 to vector<16x1xf32>
    %351 = arith.divf %349, %350 : vector<16x1xf32>
    %352 = vector.broadcast %351 : vector<16x1xf32> to vector<16x64xf32>
    %353 = arith.subf %345, %352 : vector<16x64xf32>
    %354 = arith.mulf %353, %353 : vector<16x64xf32>
    %cst_109 = arith.constant dense<0.000000e+00> : vector<16xf32>
    %355 = vector.multi_reduction <add>, %354, %cst_109 [1] : vector<16x64xf32> to vector<16xf32>
    %356 = vector.shape_cast %355 : vector<16xf32> to vector<16x1xf32>
    %cst_110 = arith.constant 6.400000e+01 : f32
    %357 = vector.broadcast %cst_110 : f32 to vector<16x1xf32>
    %358 = arith.divf %356, %357 : vector<16x1xf32>
    %359 = vector.broadcast %351 : vector<16x1xf32> to vector<16x64xf32>
    %360 = arith.subf %345, %359 : vector<16x64xf32>
    %cst_111 = arith.constant 9.99999974E-6 : f32
    %361 = vector.broadcast %cst_111 : f32 to vector<16x1xf32>
    %362 = arith.addf %358, %361 : vector<16x1xf32>
    %363 = math.rsqrt %362 : vector<16x1xf32>
    %364 = vector.broadcast %363 : vector<16x1xf32> to vector<16x64xf32>
    %365 = arith.mulf %360, %364 : vector<16x64xf32>
    %366 = vector.broadcast %346 : vector<1x64xf32> to vector<16x64xf32>
    %367 = arith.mulf %365, %366 : vector<16x64xf32>
    %368 = vector.broadcast %347 : vector<1x64xf32> to vector<16x64xf32>
    %369 = arith.addf %367, %368 : vector<16x64xf32>
    %c0_112 = arith.constant 0 : index
    %c0_113 = arith.constant 0 : index
    %370 = vector.load %arg8[%c0_112, %c0_113] : memref<64x512xf32, #tpu.memory_space<vmem>>, vector<64x512xf32>
    %cst_114 = arith.constant dense<0.000000e+00> : vector<16x512xf32>
    %371 = tpu.matmul %369, %370, %cst_114 {dimension_numbers = #tpu.dot_dimension_numbers<[1], [0], [0], [1], [0, 0, 1, 1], [], []>} : vector<16x64xf32>, vector<64x512xf32>, vector<16x512xf32> -> vector<16x512xf32>
    %c0_115 = arith.constant 0 : index
    %c0_116 = arith.constant 0 : index
    %372 = vector.load %arg9[%c0_115, %c0_116] : memref<16x512xf32, #tpu.memory_space<vmem>>, vector<16x512xf32>
    tpu.vector_store %arg9[%c0_115, %c0_116], %371 {strides = array<i32>} : memref<16x512xf32, #tpu.memory_space<vmem>>, vector<16x512xf32>,
    return
  }
}

</mosaic_0001>

<bundles_post_ra>
// kernel: tinygpt_forward.1
= control target key start
LH: loop header
LB: loop body
LE: loop exit
PB: predicated region body
PF: predicated region fallthrough
CT: control target
= control target key end

     0   :  { %vm42_vm0 = vcmask 523264   ;;  %s6210_s0 = inlined_call_operand.vmem [shape: f32[16,64], index: 0, kind: input, shape index: {}]   ;;  %s6211_s1 = inlined_call_operand.vmem [shape: f32[2,64,192], index: 1, kind: input, shape index: {}]   ;;  %s6212_s2 = inlined_call_operand.vmem [shape: f32[2,64,64], index: 2, kind: input, shape index: {}]   ;;  %s6213_s3 = inlined_call_operand.vmem [shape: f32[2,6,64], index: 3, kind: input, shape index: {}]   ;;  %s6214_s4 = inlined_call_operand.vmem [shape: f32[2,64,256], index: 4, kind: input, shape index: {}]   ;;  %s6215_s5 = inlined_call_operand.vmem [shape: f32[2,256], index: 5, kind: input, shape index: {}]   ;;  %s6216_s6 = inlined_call_operand.vmem [shape: f32[2,256,64], index: 6, kind: input, shape index: {}]   ;;  %s6217_s7 = inlined_call_operand.vmem [shape: f32[2,64], index: 7, kind: input, shape index: {}]   ;;  %s6218_s8 = inlined_call_operand.vmem [shape: f32[64,512], index: 8, kind: input, shape index: {}]   ;;  %s6219_s9 = inlined_call_operand.hbm [shape: f32[16,512], index: 9, kind: output, shape index: {}]  }
   0x1   :  { %v5122_v0 = vld [vmem:[%s6210_s0] sm:$0xff]  ;;  %v5127_v1 = vld [vmem:[%s6210_s0 + $0x8] sm:$0xff] }
   0x2   :  { %14 = vsyncpa [#allocation3], 0  ;;  %v43_v2 = vsel %vm42_vm0, %v5122_v0, 0.0  ;;  %v46_v3 = vsel %vm42_vm0, %v5127_v1, 0.0  ;;  %v83_v14 = vld [vmem:[%s6211_s1 + $0x8] sm:$0xff]  ;;  %v85_v15 = vld [vmem:[%s6211_s1 + $0x18] sm:$0xff]  ;;  %v35_v41 = vlaneseq }
   0x3   :  { %44 = vadd.xlane.f32.xlu0 %v43_v2  ;;  %v4709_v16 = vpack.c.bf16 %v85_v15, %v83_v14  ;;  %v82_v17 = vld [vmem:[%s6211_s1] sm:$0xff]  ;;  %v84_v18 = vld [vmem:[%s6211_s1 + $0x10] sm:$0xff]  ;;  %v87_v20 = vld [vmem:[%s6211_s1 + $0x28] sm:$0xff]  ;;  %v5056_v33 = vmov 0.0   ;;  %vm5057_vm1 = vmmov 0   ;;  %s5058_s24 = smov 112  }
   0x4   :  { %v4711_v19 = vpack.c.bf16 %v84_v18, %v82_v17  ;;  %v89_v21 = vld [vmem:[%s6211_s1 + $0x38] sm:$0xff]  ;;  %v86_v23 = vld [vmem:[%s6211_s1 + $0x20] sm:$0xff]  ;;  %v88_v24 = vld [vmem:[%s6211_s1 + $0x30] sm:$0xff]  ;;  %168 = vmatprep.mubr.f32.mxu0 %v5056_v33  ;;  %4511 = vmatprep.subr.mxu1 %v5056_v33  ;;  %v5189_v45 = vshrl.u32 %v35_v41, 7  ;;  %s5059_s25 = smov 80   ;;  %s5060_s26 = smov 64  }
   0x5   :  { %4710 = vmatprep.subr.bf16.mxu0 %v4709_v16  ;;  %v4713_v22 = vpack.c.bf16 %v89_v21, %v87_v20  ;;  %v4715_v25 = vpack.c.bf16 %v88_v24, %v86_v23  ;;  %v91_v26 = vld [vmem:[%s6211_s1 + $0x48] sm:$0xff]  ;;  %v93_v27 = vld [vmem:[%s6211_s1 + $0x58] sm:$0xff]  ;;  %v90_v28 = vld [vmem:[%s6211_s1 + $0x40] sm:$0xff]  ;;  %4513 = vmatprep.mubr.msk.f32.mxu1 %vm5057_vm1, %v5056_v33  ;;  %s5061_s27 = smov 96   ;;  %vm217_vm2 = vcmask 130048   ;;  %v38_v16 = vand.u32 127, %v35_v41 }
   0x6   :  { %4712 = vmatpush1.bf16.msra.mxu0 %v4711_v19  ;;  %v4717_v29 = vpack.c.bf16 %v93_v27, %v91_v26  ;;  %v92_v30 = vld [vmem:[%s6211_s1 + $0x50] sm:$0xff]  ;;  %v95_v31 = vld [vmem:[%s6211_s1 + $0x68] sm:$0xff]  ;;  %v97_v32 = vld [vmem:[%s6211_s1 + $0x78] sm:$0xff]  ;;  %v5192_v47 = vsub.s32 0, %v5189_v45  ;;  %v5200_v49 = vsub.s32 1, %v5189_v45  ;;  %vm824_vm4 = vcmask 64512  }
   0x7   :  { %47 = vadd.xlane.f32.xlu0 %v46_v3  ;;  %4714 = vmatprep.subr.bf16.mxu0 %v4713_v22  ;;  %v4719_v34 = vpack.c.bf16 %v92_v30, %v90_v28  ;;  %v4721_v35 = vpack.c.bf16 %v97_v32, %v95_v31  ;;  %v94_v36 = vld [vmem:[%s6211_s1 + $0x60] sm:$0xff]  ;;  %v96_v37 = vld [vmem:[%s6211_s1 + $0x70] sm:$0xff]  ;;  %vm39_vm3 = vcmp.ge.s32.totalorder %v5189_v45, %v38_v16  ;;  %v5062_v17 = vmov -1e+30   ;;  %s5063_s22 = smov 16   ;;  %s5064_s23 = smov 32  }
   0x8   :  { %v4723_v38 = vpack.c.bf16 %v96_v37, %v94_v36  ;;  %v5197_v48 = vld [vmem:[%s6213_s3] sm:$0x3f]  ;;  %v5277_v18 = vsel %vm39_vm3, 0.0, %v5062_v17  ;;  %s5065_s28 = smov 48   ;;  %vm1523_vm5 = vcmask 261120   ;;  %vm1526_vm6 = vcmask 392192  }
   0x9   :  { %v73_v50 = vrot.slane %v5197_v48, %v5192_v47  ;;  %v79_v53 = vrot.slane %v5197_v48, %v5200_v49 }
   0xa   :  { %4716 = vmatpush1.bf16.msra.mxu0 %v4715_v25 }
   0xb   :  { %4718 = vmatprep.subr.bf16.mxu0 %v4717_v29 }
   0xe   :  { %4720 = vmatpush1.bf16.msra.mxu0 %v4719_v34 }
   0xf   :  { %4722 = vmatprep.subr.bf16.mxu0 %v4721_v35 }
  0x12   :  { %4724 = vmatpush1.bf16.msra.mxu0 %v4723_v38 }
  0x13   :  { %4536 = vmatprep.subr.mxu0 %v5056_v33 }
  0x90   :  { %v45_v4 = vpop.xlane.xlu0 %44 }
  0x91   :  { %v50_v5 = vmul.f32 0.015625, %v45_v4 }
  0x93   :  { %v52_v6 = vsub.f32 %v5122_v0, %v50_v5 }
  0x94   :  { %v48_v7 = vpop.xlane.xlu0 %47 }
  0x95   :  { %v51_v8 = vmul.f32 0.015625, %v48_v7  ;;  %v54_v9 = vmul.f32 %v52_v6, %v52_v6 }
  0x97   :  { %v53_v10 = vsub.f32 %v5127_v1, %v51_v8  ;;  %v56_v11 = vsel %vm42_vm0, %v54_v9, 0.0 }
  0x98   :  { %57 = vadd.xlane.f32.xlu1 %v56_v11 }
  0x99   :  { %v55_v12 = vmul.f32 %v53_v10, %v53_v10 }
  0x9b   :  { %v59_v13 = vsel %vm42_vm0, %v55_v12, 0.0 }
  0x9c   :  { %60 = vadd.xlane.f32.xlu1 %v59_v13 }
 0x125   :  { %v58_v39 = vpop.xlane.xlu1 %57 }
 0x126   :  { %v62_v40 = vmul.f32 0.015625, %v58_v39 }
 0x128   :  { %v64_v42 = vadd.f32 1e-05, %v62_v40 }
 0x129   :  { %v61_v43 = vpop.xlane.xlu1 %60 }
 0x12a   :  { %4914 = vrsqrt.f32 %v64_v42  ;;  %v63_v44 = vmul.f32 0.015625, %v61_v43 }
 0x12c   :  { %v65_v46 = vadd.f32 1e-05, %v63_v44 }
 0x12e   :  { %4916 = vrsqrt.f32 %v65_v46 }
 0x134   :  { %v4915_v51 = vpop.eup %4914 }
 0x135   :  { %v68_v52 = vmul.f32 %v4915_v51, %v52_v6 }
 0x137   :  { %v74_v54 = vmul.f32 %v73_v50, %v68_v52 }
 0x138   :  { %v4917_v55 = vpop.eup %4916 }
 0x139   :  { %v80_v56 = vadd.f32 %v79_v53, %v74_v54  ;;  %v69_v57 = vmul.f32 %v4917_v55, %v53_v10 }
 0x13b   :  { %4211 = vmatmul.mubr.msk.f32.vlgmr.msra.gmra.mrb[0].mxu0 %vm42_vm0, %v80_v56  ;;  %v75_v58 = vmul.f32 %v73_v50, %v69_v57 }
 0x13c   :  { %174 = vmatprep.mubr.f32.mxu0 %v5056_v33 }
 0x13d   :  { %v81_v59 = vadd.f32 %v79_v53, %v75_v58 }
 0x13f   :  { %4212 = vmatmul.mubr.msk.f32.gmra.mrb[2].mxu0 %vm42_vm0, %v81_v59 }
 0x140   :  { %4538 = vmatprep.mubr.msk.f32.mxu0 %vm5057_vm1, %v5056_v33 }
 0x20e   :  { %v170_v60 = vpop.f32.mrb[0].mxu0 }
 0x20f   :  { %183 = vrot.lane.b32.xlu0 %v170_v60, %s5058_s24  ;;  %v5214_v61 = vpop.f32.mrb[1].mxu0 }
 0x212   :  { %v176_v62 = vpop.f32.mrb[2].mxu0 }
 0x213   :  { %191 = vrot.lane.b32.xlu0 %v170_v60, %s5059_s25  ;;  %185 = vrot.lane.b32.xlu1 %v176_v62, %s5058_s24  ;;  %v5218_v63 = vpop.f32.mrb[3].mxu0 }
 0x217   :  { %215 = vrot.lane.b32.xlu0 %v170_v60, %s5060_s26  ;;  %187 = vrot.lane.b32.xlu1 %v170_v60, %s5061_s27 }
 0x21b   :  { %189 = vrot.lane.b32.xlu1 %v176_v62, %s5061_s27 }
 0x21f   :  { %193 = vrot.lane.b32.xlu1 %v176_v62, %s5059_s25 }
 0x223   :  { %292 = vrot.lane.b32.xlu1 %v176_v62, %s5060_s26 }
 0x281   :  { %v184_v2 = vpop.permute.xlu0 %183 }
 0x282   :  { %368 = vrot.lane.b32.xlu0 %v184_v2, %s5060_s26 }
 0x285   :  { %v186_v3 = vpop.permute.xlu1 %185  ;;  %v192_v4 = vpop.permute.xlu0 %191 }
 0x286   :  { %444 = vrot.lane.b32.xlu1 %v186_v3, %s5060_s26 }
 0x289   :  { %v188_v5 = vpop.permute.xlu1 %187  ;;  %v216_v6 = vpop.permute.xlu0 %215 }
 0x28a   :  { %520 = vrot.lane.b32.xlu0 %v188_v5, %s5060_s26  ;;  %4512 = vmatpush3.xpose.msk.msra.mxu1 %vm217_vm2, %v216_v6 }
 0x28b   :  { %4516 = vmatprep.subr.mxu1 %v5056_v33 }
 0x28d   :  { %v190_v7 = vpop.permute.xlu1 %189  ;;  %4514 = vmatmul.mubr.msk.f32.vlgmr.msra.gmra.mrb[0].mxu1 %vm217_vm2, %v170_v60 }
 0x28e   :  { %596 = vrot.lane.b32.xlu1 %v190_v7, %s5060_s26  ;;  %672 = vrot.lane.b32.xlu0 %v192_v4, %s5060_s26 }
 0x28f   :  { %4518 = vmatprep.mubr.msk.f32.mxu1 %vm5057_vm1, %v5056_v33 }
 0x291   :  { %v194_v8 = vpop.permute.xlu1 %193 }
 0x292   :  { %748 = vrot.lane.b32.xlu1 %v194_v8, %s5060_s26 }
 0x295   :  { %v293_v9 = vpop.permute.xlu1 %292 }
 0x296   :  { %4517 = vmatpush3.xpose.msk.msra.mxu1 %vm217_vm2, %v293_v9 }
 0x297   :  { %4521 = vmatprep.subr.mxu1 %v5056_v33 }
 0x299   :  { %4519 = vmatmul.mubr.msk.f32.vlgmr.msra.gmra.mrb[2].mxu1 %vm217_vm2, %v176_v62 }
 0x29a   :  { %4523 = vmatprep.mubr.msk.f32.mxu1 %vm5057_vm1, %v5056_v33 }
 0x2f4   :  { %v369_v10 = vpop.permute.xlu0 %368 }
 0x2f5   :  { %4522 = vmatpush3.xpose.msk.msra.mxu1 %vm217_vm2, %v369_v10 }
 0x2f6   :  { %4526 = vmatprep.subr.mxu1 %v5056_v33 }
 0x2f8   :  { %v445_v11 = vpop.permute.xlu1 %444  ;;  %4524 = vmatmul.mubr.msk.f32.vlgmr.msra.gmra.mrb[4].mxu1 %vm217_vm2, %v184_v2 }
 0x2f9   :  { %4527 = vmatpush3.xpose.msk.msra.mxu1 %vm217_vm2, %v445_v11  ;;  %4528 = vmatprep.mubr.msk.f32.mxu1 %vm5057_vm1, %v5056_v33 }
 0x2fa   :  { %4531 = vmatprep.subr.mxu1 %v5056_v33 }
 0x2fc   :  { %4529 = vmatmul.mubr.msk.f32.vlgmr.msra.gmra.mrb[6].mxu1 %vm217_vm2, %v186_v3  ;;  %v521_v12 = vpop.permute.xlu0 %520 }
 0x2fd   :  { %4532 = vmatpush3.xpose.msk.msra.mxu1 %vm217_vm2, %v521_v12  ;;  %4533 = vmatprep.mubr.msk.f32.mxu1 %vm5057_vm1, %v5056_v33 }
 0x2fe   :  { %4541 = vmatprep.subr.mxu1 %v5056_v33 }
 0x300   :  { %v597_v13 = vpop.permute.xlu1 %596  ;;  %4534 = vmatmul.mubr.msk.f32.vlgmr.msra.gmra.mrb[8].mxu1 %vm217_vm2, %v188_v5  ;;  %v673_v14 = vpop.permute.xlu0 %672 }
 0x301   :  { %4537 = vmatpush3.xpose.msk.msra.mxu0 %vm217_vm2, %v597_v13  ;;  %4542 = vmatpush3.xpose.msk.msra.mxu1 %vm217_vm2, %v673_v14 }
 0x302   :  { %4543 = vmatprep.mubr.msk.f32.mxu1 %vm5057_vm1, %v5056_v33  ;;  %4546 = vmatprep.subr.mxu0 %v5056_v33 }
 0x303   :  { %4551 = vmatprep.subr.mxu1 %v5056_v33 }
 0x304   :  { %4539 = vmatmul.mubr.msk.f32.vlgmr.msra.gmra.mrb[4].mxu0 %vm217_vm2, %v190_v7  ;;  %v749_v15 = vpop.permute.xlu1 %748  ;;  %4544 = vmatmul.mubr.msk.f32.vlgmr.msra.gmra.mrb[10].mxu1 %vm217_vm2, %v192_v4 }
 0x305   :  { %4547 = vmatpush3.xpose.msk.msra.mxu0 %vm217_vm2, %v749_v15  ;;  %4552 = vmatpush3.msra.mxu1 %v5214_v61 }
 0x306   :  { %4548 = vmatprep.mubr.msk.f32.mxu0 %vm5057_vm1, %v5056_v33  ;;  %4556 = vmatprep.subr.mxu0 %v5056_v33 }
 0x307   :  { %4553 = vmatprep.mubr.msk.f32.mxu1 %vm5057_vm1, %v5056_v33  ;;  %4561 = vmatprep.subr.mxu1 %v5056_v33 }
 0x308   :  { %4549 = vmatmul.mubr.msk.f32.vlgmr.msra.gmra.mrb[6].mxu0 %vm217_vm2, %v194_v8 }
 0x309   :  { %4557 = vmatpush3.msra.mxu0 %v5218_v63  ;;  %4558 = vmatprep.mubr.msk.f32.mxu0 %vm5057_vm1, %v5056_v33 }
 0x30a   :  { %4566 = vmatprep.subr.mxu0 %v5056_v33 }
 0x360   :  { %v288_v19 = vpop.f32.mrb[0].mxu1 }
 0x361   :  { %v289_v20 = vadd.f32 %v288_v19, %v5277_v18  ;;  %v4515_v21 = vpop.f32.mrb[1].mxu1 }
 0x363   :  { %v825_v22 = vsel %vm824_vm4, %v289_v20, -inf }
 0x364   :  { %826 = vmax.xlane.f32.xlu0 %v825_v22 }
 0x36c   :  { %v364_v23 = vpop.f32.mrb[2].mxu1 }
 0x36d   :  { %v365_v24 = vadd.f32 %v364_v23, %v5277_v18  ;;  %v4520_v25 = vpop.f32.mrb[3].mxu1 }
 0x36f   :  { %v828_v26 = vsel %vm824_vm4, %v365_v24, -inf }
 0x370   :  { %829 = vmax.xlane.f32.xlu1 %v828_v26 }
 0x3cb   :  { %v440_v27 = vpop.f32.mrb[4].mxu1 }
 0x3cc   :  { %v441_v28 = vadd.f32 %v440_v27, %v5277_v18  ;;  %v4525_v29 = vpop.f32.mrb[5].mxu1 }
 0x3ce   :  { %v831_v30 = vsel %vm824_vm4, %v441_v28, -inf }
 0x3cf   :  { %832 = vmax.xlane.f32.xlu0 %v831_v30  ;;  %v516_v31 = vpop.f32.mrb[6].mxu1 }
 0x3d0   :  { %v517_v32 = vadd.f32 %v516_v31, %v5277_v18  ;;  %v4530_v34 = vpop.f32.mrb[7].mxu1 }
 0x3d2   :  { %v834_v35 = vsel %vm824_vm4, %v517_v32, -inf }
 0x3d3   :  { %835 = vmax.xlane.f32.xlu0 %v834_v35  ;;  %v592_v36 = vpop.f32.mrb[8].mxu1 }
 0x3d4   :  { %v593_v37 = vadd.f32 %v592_v36, %v5277_v18  ;;  %v4535_v38 = vpop.f32.mrb[9].mxu1 }
 0x3d6   :  { %v837_v39 = vsel %vm824_vm4, %v593_v37, -inf }
 0x3d7   :  { %v668_v40 = vpop.f32.mrb[4].mxu0  ;;  %838 = vmax.xlane.f32.xlu0 %v837_v39  ;;  %v744_v41 = vpop.f32.mrb[10].mxu1 }
 0x3d8   :  { %v669_v42 = vadd.f32 %v668_v40, %v5277_v18  ;;  %v745_v43 = vadd.f32 %v744_v41, %v5277_v18  ;;  %v4540_v44 = vpop.f32.mrb[5].mxu0  ;;  %v4545_v46 = vpop.f32.mrb[11].mxu1 }
 0x3da   :  { %v840_v50 = vsel %vm824_vm4, %v669_v42, -inf  ;;  %v843_v51 = vsel %vm824_vm4, %v745_v43, -inf }
 0x3db   :  { %v820_v52 = vpop.f32.mrb[6].mxu0  ;;  %841 = vmax.xlane.f32.xlu1 %v840_v50  ;;  %844 = vmax.xlane.f32.xlu0 %v843_v51 }
 0x3dc   :  { %v821_v53 = vadd.f32 %v820_v52, %v5277_v18  ;;  %v4550_v54 = vpop.f32.mrb[7].mxu0 }
 0x3de   :  { %v846_v55 = vsel %vm824_vm4, %v821_v53, -inf }
 0x3df   :  { %847 = vmax.xlane.f32.xlu1 %v846_v55 }
 0x3f0   :  { %199 = vrot.lane.b32.xlu1 %v5218_v63, %s5058_s24 }
 0x3f1   :  { %197 = vrot.lane.b32.xlu0 %v5214_v61, %s5058_s24  ;;  %v827_v56 = vpop.xlane.xlu0 %826 }
 0x3f2   :  { %v849_v57 = vsub.f32 %v289_v20, %v827_v56 }
 0x3f4   :  { %203 = vrot.lane.b32.xlu1 %v5214_v61, %s5061_s27  ;;  %v857_v58 = vmul.f32 1.442695, %v849_v57 }
 0x3f6   :  { %4918 = vpow2.f32 %v857_v58 }
 0x3f8   :  { %205 = vrot.lane.b32.xlu1 %v5218_v63, %s5061_s27 }
 0x3fd   :  { %v830_v59 = vpop.xlane.xlu1 %829 }
 0x3fe   :  { %v850_v60 = vsub.f32 %v365_v24, %v830_v59 }
 0x400   :  { %v859_v62 = vmul.f32 1.442695, %v850_v60  ;;  %v4919_v2 = vpop.eup %4918 }
 0x401   :  { %v873_v3 = vsel %vm824_vm4, %v4919_v2, 0.0 }
 0x402   :  { %4920 = vpow2.f32 %v859_v62 }
 0x40c   :  { %v4921_v4 = vpop.eup %4920 }
 0x40d   :  { %v876_v5 = vsel %vm824_vm4, %v4921_v4, 0.0 }
 0x410   :  { %874 = vadd.xlane.f32.xlu0 %v873_v3 }
 0x41c   :  { %877 = vadd.xlane.f32.xlu1 %v876_v5 }
 0x45c   :  { %v833_v6 = vpop.xlane.xlu0 %832 }
 0x45d   :  { %v851_v7 = vsub.f32 %v441_v28, %v833_v6 }
 0x45f   :  { %v861_v8 = vmul.f32 1.442695, %v851_v7 }
 0x460   :  { %v836_v9 = vpop.xlane.xlu0 %835 }
 0x461   :  { %4922 = vpow2.f32 %v861_v8  ;;  %v852_v10 = vsub.f32 %v517_v32, %v836_v9 }
 0x463   :  { %v863_v11 = vmul.f32 1.442695, %v852_v10 }
 0x464   :  { %v839_v12 = vpop.xlane.xlu0 %838 }
 0x465   :  { %4924 = vpow2.f32 %v863_v11  ;;  %v853_v13 = vsub.f32 %v593_v37, %v839_v12 }
 0x467   :  { %v865_v14 = vmul.f32 1.442695, %v853_v13 }
 0x468   :  { %v842_v15 = vpop.xlane.xlu1 %841  ;;  %v845_v16 = vpop.xlane.xlu0 %844 }
 0x469   :  { %4926 = vpow2.f32 %v865_v14  ;;  %v854_v17 = vsub.f32 %v669_v42, %v842_v15  ;;  %v855_v19 = vsub.f32 %v745_v43, %v845_v16  ;;  %v1529_v14 = vld [vmem:[%s6212_s2] sm:$0xff]  ;;  %v1530_v15 = vld [vmem:[%s6212_s2 + $0x8] sm:$0xff] }
 0x46a   :  { %v4725_v16 = vpack.c.bf16 %v1530_v15, %v1529_v14  ;;  %v1664_v15 = vld [vmem:[%s6214_s4] sm:$0xff] }
 0x46b   :  { %v4923_v20 = vpop.eup %4922  ;;  %v867_v21 = vmul.f32 1.442695, %v854_v17  ;;  %v869_v22 = vmul.f32 1.442695, %v855_v19  ;;  %v1531_v17 = vld [vmem:[%s6212_s2 + $0x10] sm:$0xff]  ;;  %v1532_v19 = vld [vmem:[%s6212_s2 + $0x18] sm:$0xff] }
 0x46c   :  { %v848_v23 = vpop.xlane.xlu1 %847  ;;  %v879_v24 = vsel %vm824_vm4, %v4923_v20, 0.0  ;;  %v198_v38 = vpop.permute.xlu0 %197 }
 0x46d   :  { %4928 = vpow2.f32 %v867_v21  ;;  %v856_v25 = vsub.f32 %v821_v53, %v848_v23  ;;  %880 = vadd.xlane.f32.xlu0 %v879_v24  ;;  %v1533_v21 = vld [vmem:[%s6212_s2 + $0x20] sm:$0xff]  ;;  %v1535_v24 = vld [vmem:[%s6212_s2 + $0x30] sm:$0xff] }
 0x46e   :  { %4930 = vpow2.f32 %v869_v22  ;;  %v1534_v22 = vld [vmem:[%s6212_s2 + $0x28] sm:$0xff] }
 0x46f   :  { %v4925_v26 = vpop.eup %4924  ;;  %v871_v27 = vmul.f32 1.442695, %v856_v25  ;;  %v4733_v23 = vpack.c.bf16 %v1534_v22, %v1533_v21  ;;  %v1536_v25 = vld [vmem:[%s6212_s2 + $0x38] sm:$0xff]  ;;  %v1668_v22 = vld [vmem:[%s6214_s4 + $0x20] sm:$0xff] }
 0x470   :  { %v882_v28 = vsel %vm824_vm4, %v4925_v26, 0.0  ;;  %v200_v39 = vpop.permute.xlu1 %199 }
 0x471   :  { %4932 = vpow2.f32 %v871_v27  ;;  %883 = vadd.xlane.f32.xlu1 %v882_v28  ;;  %v4737_v27 = vpack.c.bf16 %v1536_v25, %v1535_v24  ;;  %v1673_v25 = vld [vmem:[%s6214_s4 + $0x48] sm:$0xff] }
 0x473   :  { %v4927_v29 = vpop.eup %4926 }
 0x474   :  { %v885_v30 = vsel %vm824_vm4, %v4927_v29, 0.0  ;;  %v204_v41 = vpop.permute.xlu1 %203 }
 0x475   :  { %886 = vadd.xlane.f32.xlu0 %v885_v30 }
 0x477   :  { %v5308_v31 = vpop.eup %4928 }
 0x478   :  { %v5310_v32 = vpop.eup %4930  ;;  %v888_v34 = vsel %vm824_vm4, %v5308_v31, 0.0  ;;  %v206_v42 = vpop.permute.xlu1 %205 }
 0x479   :  { %889 = vadd.xlane.f32.xlu1 %v888_v34  ;;  %v891_v35 = vsel %vm824_vm4, %v5310_v32, 0.0 }
 0x47a   :  { %892 = vadd.xlane.f32.xlu0 %v891_v35 }
 0x47b   :  { %v5316_v36 = vpop.eup %4932 }
 0x47c   :  { %v894_v37 = vsel %vm824_vm4, %v5316_v36, 0.0 }
 0x47d   :  { %895 = vadd.xlane.f32.xlu1 %v894_v37 }
 0x48e   :  { %211 = vrot.lane.b32.xlu1 %v5218_v63, %s5059_s25 }
 0x490   :  { %209 = vrot.lane.b32.xlu0 %v5214_v61, %s5059_s25 }
 0x49d   :  { %v875_v40 = vpop.xlane.xlu0 %874 }
 0x49e   :  { %4934 = vrcp.f32 %v875_v40 }
 0x4a8   :  { %v4935_v43 = vpop.eup %4934 }
 0x4a9   :  { %v898_v44 = vmul.f32 %v4935_v43, %v4919_v2  ;;  %v878_v46 = vpop.xlane.xlu1 %877 }
 0x4aa   :  { %4936 = vrcp.f32 %v878_v46 }
 0x4ab   :  { %4554 = vmatmul.mubr.msk.f32.vlgmr.msra.gmra.mrb[12].mxu1 %vm824_vm4, %v898_v44 }
 0x4ac   :  { %4562 = vmatpush3.msra.mxu1 %v198_v38  ;;  %4563 = vmatprep.mubr.msk.f32.mxu1 %vm5057_vm1, %v5056_v33 }
 0x4ad   :  { %4571 = vmatprep.subr.mxu1 %v5056_v33 }
 0x4b4   :  { %v4937_v63 = vpop.eup %4936 }
 0x4b5   :  { %v900_v61 = vmul.f32 %v4937_v63, %v4921_v4 }
 0x4b7   :  { %4559 = vmatmul.mubr.msk.f32.vlgmr.msra.gmra.mrb[8].mxu0 %vm824_vm4, %v900_v61 }
 0x4b8   :  { %4567 = vmatpush3.msra.mxu0 %v200_v39  ;;  %4568 = vmatprep.mubr.msk.f32.mxu0 %vm5057_vm1, %v5056_v33 }
 0x4b9   :  { %4576 = vmatprep.subr.mxu0 %v5056_v33 }
 0x4fa   :  { %v881_v50 = vpop.xlane.xlu0 %880 }
 0x4fb   :  { %4938 = vrcp.f32 %v881_v50 }
 0x4fe   :  { %v884_v51 = vpop.xlane.xlu1 %883 }
 0x4ff   :  { %4940 = vrcp.f32 %v884_v51 }
 0x502   :  { %v887_v52 = vpop.xlane.xlu0 %886 }
 0x503   :  { %4942 = vrcp.f32 %v887_v52 }
 0x505   :  { %v4939_v53 = vpop.eup %4938 }
 0x506   :  { %v902_v54 = vmul.f32 %v4939_v53, %v4923_v20  ;;  %v890_v55 = vpop.xlane.xlu1 %889  ;;  %v4729_v20 = vpack.c.bf16 %v1532_v19, %v1531_v17  ;;  %v1669_v19 = vld [vmem:[%s6214_s4 + $0x28] sm:$0xff] }
 0x507   :  { %4944 = vrcp.f32 %v890_v55  ;;  %v893_v56 = vpop.xlane.xlu0 %892 }
 0x508   :  { %4946 = vrcp.f32 %v893_v56  ;;  %4564 = vmatmul.mubr.msk.f32.vlgmr.msra.gmra.mrb[14].mxu1 %vm824_vm4, %v902_v54  ;;  %v1622_v54 = vsub.s32 4, %v5189_v45 }
 0x509   :  { %v4941_v57 = vpop.eup %4940  ;;  %4572 = vmatpush3.msra.mxu1 %v204_v41  ;;  %4573 = vmatprep.mubr.msk.f32.mxu1 %vm5057_vm1, %v5056_v33 }
 0x50a   :  { %v904_v58 = vmul.f32 %v4941_v57, %v4925_v26  ;;  %v896_v59 = vpop.xlane.xlu1 %895  ;;  %4581 = vmatprep.subr.mxu1 %v5056_v33  ;;  %v1623_v55 = vrot.slane %v5197_v48, %v1622_v54 }
 0x50b   :  { %4948 = vrcp.f32 %v896_v59  ;;  %v210_v2 = vpop.permute.xlu0 %209 }
 0x50c   :  { %4569 = vmatmul.mubr.msk.f32.vlgmr.msra.gmra.mrb[10].mxu0 %vm824_vm4, %v904_v58 }
 0x50d   :  { %v4943_v60 = vpop.eup %4942  ;;  %4577 = vmatpush3.msra.mxu0 %v206_v42  ;;  %4578 = vmatprep.mubr.msk.f32.mxu0 %vm5057_vm1, %v5056_v33 }
 0x50e   :  { %v906_v62 = vmul.f32 %v4943_v60, %v4927_v29  ;;  %4586 = vmatprep.subr.mxu0 %v5056_v33  ;;  %v212_v7 = vpop.permute.xlu1 %211 }
 0x510   :  { %4574 = vmatmul.mubr.msk.f32.vlgmr.msra.gmra.mrb[16].mxu1 %vm824_vm4, %v906_v62 }
 0x511   :  { %v4945_v3 = vpop.eup %4944  ;;  %4582 = vmatpush3.msra.mxu1 %v210_v2  ;;  %4583 = vmatprep.mubr.msk.f32.mxu1 %vm5057_vm1, %v5056_v33 }
 0x512   :  { %v4947_v4 = vpop.eup %4946  ;;  %v908_v5 = vmul.f32 %v4945_v3, %v5308_v31  ;;  %4726 = vmatprep.subr.bf16.mxu1 %v4725_v16 }
 0x513   :  { %v910_v6 = vmul.f32 %v4947_v4, %v5310_v32 }
 0x514   :  { %4579 = vmatmul.mubr.msk.f32.vlgmr.msra.gmra.mrb[12].mxu0 %vm824_vm4, %v908_v5 }
 0x515   :  { %v4949_v8 = vpop.eup %4948  ;;  %4584 = vmatmul.mubr.msk.f32.vlgmr.msra.gmra.mrb[18].mxu1 %vm824_vm4, %v910_v6  ;;  %4587 = vmatpush3.msra.mxu0 %v212_v7 }
 0x516   :  { %v912_v9 = vmul.f32 %v4949_v8, %v5316_v36  ;;  %4588 = vmatprep.mubr.msk.f32.mxu0 %vm5057_vm1, %v5056_v33  ;;  %4728 = vmatpush3.bf16.msra.mxu1 %v4725_v16  ;;  %v1666_v16 = vld [vmem:[%s6214_s4 + $0x10] sm:$0xff] }
 0x517   :  { %4730 = vmatprep.subr.bf16.mxu1 %v4729_v20  ;;  %v4743_v17 = vpack.c.bf16 %v1666_v16, %v1664_v15  ;;  %v1905_v16 = vld [vmem:[%s6216_s6 + $0xb0] sm:$0xff] }
 0x518   :  { %4589 = vmatmul.mubr.msk.f32.vlgmr.msra.gmra.mrb[14].mxu0 %vm824_vm4, %v912_v9 }
 0x519   :  { %1762 = vmatprep.mubr.f32.mxu0 %v5056_v33 }
 0x51a   :  { %4732 = vmatpush3.bf16.msra.mxu1 %v4729_v20  ;;  %v1671_v20 = vld [vmem:[%s6214_s4 + $0x38] sm:$0xff] }
 0x51b   :  { %4734 = vmatprep.subr.bf16.mxu1 %v4733_v23  ;;  %v4745_v21 = vpack.c.bf16 %v1671_v20, %v1669_v19  ;;  %v1889_v20 = vld [vmem:[%s6216_s6 + $0x30] sm:$0xff] }
 0x51e   :  { %4736 = vmatpush3.bf16.msra.mxu1 %v4733_v23  ;;  %v1670_v23 = vld [vmem:[%s6214_s4 + $0x30] sm:$0xff] }
 0x51f   :  { %4738 = vmatprep.subr.bf16.mxu1 %v4737_v27  ;;  %v4747_v24 = vpack.c.bf16 %v1670_v23, %v1668_v22  ;;  %v1907_v23 = vld [vmem:[%s6216_s6 + $0xc0] sm:$0xff] }
 0x522   :  { %4740 = vmatpush3.bf16.msra.mxu1 %v4737_v27 }
 0x57e   :  { %v982_v10 = vpop.f32.mrb[12].mxu1 }
 0x57f   :  { %v4555_v11 = vpop.f32.mrb[13].mxu1 }
 0x58a   :  { %v1055_v12 = vpop.f32.mrb[8].mxu0 }
 0x58b   :  { %v4560_v13 = vpop.f32.mrb[9].mxu0 }
 0x58c   :  { %v1667_v13 = vld [vmem:[%s6214_s4 + $0x18] sm:$0xff] }
 0x5db   :  { %v1128_v26 = vpop.f32.mrb[14].mxu1 }
 0x5dc   :  { %1499 = vrot.lane.b32.xlu0 %v1128_v26, %s5063_s22  ;;  %v4565_v28 = vpop.f32.mrb[15].mxu1  ;;  %v1675_v26 = vld [vmem:[%s6214_s4 + $0x58] sm:$0xff] }
 0x5dd   :  { %v4749_v27 = vpack.c.bf16 %v1675_v26, %v1673_v25  ;;  %v1672_v28 = vld [vmem:[%s6214_s4 + $0x40] sm:$0xff] }
 0x5de   :  { %v1891_v26 = vld [vmem:[%s6216_s6 + $0x40] sm:$0xff] }
 0x5df   :  { %v1201_v29 = vpop.f32.mrb[10].mxu0 }
 0x5e0   :  { %1501 = vrot.lane.b32.xlu1 %v1201_v29, %s5063_s22  ;;  %v4570_v30 = vpop.f32.mrb[11].mxu0  ;;  %v1674_v29 = vld [vmem:[%s6214_s4 + $0x50] sm:$0xff] }
 0x5e1   :  { %v4751_v30 = vpack.c.bf16 %v1674_v29, %v1672_v28  ;;  %v1909_v29 = vld [vmem:[%s6216_s6 + $0xd0] sm:$0xff] }
 0x5e3   :  { %v1274_v31 = vpop.f32.mrb[16].mxu1 }
 0x5e4   :  { %1507 = vrot.lane.b32.xlu0 %v1274_v31, %s5064_s23  ;;  %v4575_v32 = vpop.f32.mrb[17].mxu1  ;;  %v1677_v31 = vld [vmem:[%s6214_s4 + $0x68] sm:$0xff] }
 0x5e5   :  { %v1679_v32 = vld [vmem:[%s6214_s4 + $0x78] sm:$0xff] }
 0x5e7   :  { %v1347_v34 = vpop.f32.mrb[12].mxu0 }
 0x5e8   :  { %v1420_v35 = vpop.f32.mrb[18].mxu1  ;;  %1509 = vrot.lane.b32.xlu1 %v1347_v34, %s5064_s23  ;;  %v4580_v36 = vpop.f32.mrb[13].mxu0  ;;  %v1676_v34 = vld [vmem:[%s6214_s4 + $0x60] sm:$0xff] }
 0x5e9   :  { %1515 = vrot.lane.b32.xlu0 %v1420_v35, %s5065_s28  ;;  %v4585_v37 = vpop.f32.mrb[19].mxu1  ;;  %v4753_v35 = vpack.c.bf16 %v1679_v32, %v1677_v31  ;;  %v1678_v36 = vld [vmem:[%s6214_s4 + $0x70] sm:$0xff] }
 0x5ea   :  { %v4755_v37 = vpack.c.bf16 %v1678_v36, %v1676_v34  ;;  %v1893_v32 = vld [vmem:[%s6216_s6 + $0x50] sm:$0xff]  ;;  %v1894_v34 = vld [vmem:[%s6216_s6 + $0x58] sm:$0xff]  ;;  %v1911_v36 = vld [vmem:[%s6216_s6 + $0xe0] sm:$0xff] }
 0x5eb   :  { %v1493_v38 = vpop.f32.mrb[14].mxu0 }
 0x5ec   :  { %1517 = vrot.lane.b32.xlu1 %v1493_v38, %s5065_s28  ;;  %v4590_v39 = vpop.f32.mrb[15].mxu0 }
 0x64e   :  { %v1500_v40 = vpop.permute.xlu0 %1499 }
 0x64f   :  { %v1521_v43 = vsel %vm217_vm2, %v982_v10, %v1500_v40 }
 0x652   :  { %v1502_v41 = vpop.permute.xlu1 %1501 }
 0x653   :  { %v1522_v50 = vsel %vm217_vm2, %v1055_v12, %v1502_v41  ;;  %v1665_v12 = vld [vmem:[%s6214_s4 + $0x8] sm:$0xff] }
 0x654   :  { %v4741_v14 = vpack.c.bf16 %v1667_v13, %v1665_v12  ;;  %v1887_v13 = vld [vmem:[%s6216_s6 + $0x20] sm:$0xff] }
 0x656   :  { %v1508_v42 = vpop.permute.xlu0 %1507  ;;  %4742 = vmatprep.subr.bf16.mxu0 %v4741_v14  ;;  %v1888_v14 = vld [vmem:[%s6216_s6 + $0x28] sm:$0xff] }
 0x657   :  { %v1524_v46 = vsel %vm1523_vm5, %v1521_v43, %v1508_v42  ;;  %4744 = vmatpush1.bf16.msra.mxu0 %v4743_v17  ;;  %v4767_v15 = vpack.c.bf16 %v1888_v14, %v1887_v13  ;;  %v1906_v17 = vld [vmem:[%s6216_s6 + $0xb8] sm:$0xff] }
 0x658   :  { %4746 = vmatprep.subr.bf16.mxu0 %v4745_v21  ;;  %v4769_v19 = vpack.c.bf16 %v1906_v17, %v1905_v16  ;;  %v1890_v21 = vld [vmem:[%s6216_s6 + $0x38] sm:$0xff] }
 0x659   :  { %v4771_v22 = vpack.c.bf16 %v1890_v21, %v1889_v20 }
 0x65a   :  { %v1510_v44 = vpop.permute.xlu1 %1509 }
 0x65b   :  { %v1516_v63 = vpop.permute.xlu0 %1515  ;;  %v1525_v51 = vsel %vm1523_vm5, %v1522_v50, %v1510_v44  ;;  %4748 = vmatpush1.bf16.msra.mxu0 %v4747_v24  ;;  %v1654_v44 = vsub.s32 2, %v5189_v45  ;;  %v1908_v24 = vld [vmem:[%s6216_s6 + $0xc8] sm:$0xff] }
 0x65c   :  { %v1527_v61 = vsel %vm1526_vm6, %v1524_v46, %v1516_v63  ;;  %4750 = vmatprep.subr.bf16.mxu0 %v4749_v27  ;;  %v1660_v46 = vsub.s32 3, %v5189_v45  ;;  %v4773_v25 = vpack.c.bf16 %v1908_v24, %v1907_v23  ;;  %v1892_v27 = vld [vmem:[%s6216_s6 + $0x48] sm:$0xff] }
 0x65d   :  { %4607 = vmatprep.mubr.msk.f32.mxu1 %vm42_vm0, %v1527_v61  ;;  %v1655_v63 = vrot.slane %v5197_v48, %v1654_v44  ;;  %v4775_v28 = vpack.c.bf16 %v1892_v27, %v1891_v26 }
 0x65e   :  { %v1518_v52 = vpop.permute.xlu1 %1517 }
 0x65f   :  { %v1528_v53 = vsel %vm1526_vm6, %v1525_v51, %v1518_v52  ;;  %4752 = vmatpush1.bf16.msra.mxu0 %v4751_v30  ;;  %v1661_v51 = vrot.slane %v5197_v48, %v1660_v46  ;;  %v1900_v48 = vld [vmem:[%s6216_s6 + $0x88] sm:$0xff]  ;;  %v1910_v30 = vld [vmem:[%s6216_s6 + $0xd8] sm:$0xff] }
 0x660   :  { %4608 = vmatmul.mubr.msk.f32.vlgmr.msra.gmra.mrb[20].mxu1 %vm42_vm0, %v1528_v53  ;;  %4754 = vmatprep.subr.bf16.mxu0 %v4753_v35  ;;  %v4777_v31 = vpack.c.bf16 %v1910_v30, %v1909_v29  ;;  %v4779_v35 = vpack.c.bf16 %v1894_v34, %v1893_v32 }
 0x663   :  { %4756 = vmatpush1.bf16.msra.mxu0 %v4755_v37  ;;  %v1912_v37 = vld [vmem:[%s6216_s6 + $0xe8] sm:$0xff] }
 0x733   :  { %v4609_v56 = vpop.f32.mrb[20].mxu1 }
 0x734   :  { %v1619_v57 = vadd.f32 %v4609_v56, %v5127_v1  ;;  %v1609_v58 = vpop.f32.mrb[21].mxu1 }
 0x735   :  { %v1618_v59 = vadd.f32 %v1609_v58, %v5122_v0 }
 0x736   :  { %v5396_v60 = vadd.f32 %v1623_v55, %v1619_v57 }
 0x737   :  { %v5398_v62 = vadd.f32 %v1623_v55, %v1618_v59  ;;  %v1899_v59 = vld [vmem:[%s6216_s6 + $0x80] sm:$0xff] }
 0x738   :  { %v1629_v2 = vsel %vm42_vm0, %v5396_v60, 0.0 }
 0x739   :  { %1630 = vadd.xlane.f32.xlu1 %v1629_v2  ;;  %v1626_v3 = vsel %vm42_vm0, %v5398_v62, 0.0  ;;  %v4757_v2 = vpack.c.bf16 %v1900_v48, %v1899_v59 }
 0x73a   :  { %1627 = vadd.xlane.f32.xlu0 %v1626_v3  ;;  %v1883_v3 = vld [vmem:[%s6216_s6] sm:$0xff] }
 0x73b   :  { %4758 = vmatprep.subr.bf16.mxu1 %v4757_v2 }
 0x7c6   :  { %v1631_v4 = vpop.xlane.xlu1 %1630 }
 0x7c7   :  { %v1633_v5 = vmul.f32 0.015625, %v1631_v4  ;;  %v1628_v6 = vpop.xlane.xlu0 %1627  ;;  %v1884_v4 = vld [vmem:[%s6216_s6 + $0x8] sm:$0xff] }
 0x7c8   :  { %v1632_v7 = vmul.f32 0.015625, %v1628_v6  ;;  %v1901_v6 = vld [vmem:[%s6216_s6 + $0x90] sm:$0xff] }
 0x7c9   :  { %v1635_v1 = vsub.f32 %v5396_v60, %v1633_v5  ;;  %v4759_v5 = vpack.c.bf16 %v1884_v4, %v1883_v3 }
 0x7ca   :  { %v1634_v0 = vsub.f32 %v5398_v62, %v1632_v7  ;;  %v1902_v7 = vld [vmem:[%s6216_s6 + $0x98] sm:$0xff] }
 0x7cb   :  { %v1637_v10 = vmul.f32 %v1635_v1, %v1635_v1  ;;  %4760 = vmatpush3.bf16.msra.mxu1 %v4759_v5 }
 0x7cc   :  { %v1636_v8 = vmul.f32 %v1634_v0, %v1634_v0 }
 0x7cd   :  { %v1641_v11 = vsel %vm42_vm0, %v1637_v10, 0.0  ;;  %v1903_v10 = vld [vmem:[%s6216_s6 + $0xa0] sm:$0xff] }
 0x7ce   :  { %v1638_v9 = vsel %vm42_vm0, %v1636_v8, 0.0  ;;  %v1886_v8 = vld [vmem:[%s6216_s6 + $0x18] sm:$0xff] }
 0x7cf   :  { %1639 = vadd.xlane.f32.xlu0 %v1638_v9 }
 0x7d3   :  { %1642 = vadd.xlane.f32.xlu0 %v1641_v11  ;;  %v1904_v11 = vld [vmem:[%s6216_s6 + $0xa8] sm:$0xff] }
 0x7d4   :  { %v4765_v12 = vpack.c.bf16 %v1904_v11, %v1903_v10 }
 0x85c   :  { %v1640_v38 = vpop.xlane.xlu0 %1639 }
 0x85d   :  { %v1644_v39 = vmul.f32 0.015625, %v1640_v38  ;;  %v4781_v38 = vpack.c.bf16 %v1912_v37, %v1911_v36 }
 0x85f   :  { %v1646_v40 = vadd.f32 1e-05, %v1644_v39  ;;  %v1895_v39 = vld [vmem:[%s6216_s6 + $0x60] sm:$0xff] }
 0x860   :  { %v1643_v41 = vpop.xlane.xlu0 %1642 }
 0x861   :  { %4950 = vrsqrt.f32 %v1646_v40  ;;  %v1645_v42 = vmul.f32 0.015625, %v1643_v41  ;;  %v1896_v40 = vld [vmem:[%s6216_s6 + $0x68] sm:$0xff] }
 0x862   :  { %v4783_v41 = vpack.c.bf16 %v1896_v40, %v1895_v39 }
 0x863   :  { %v1647_v43 = vadd.f32 1e-05, %v1645_v42  ;;  %v1913_v42 = vld [vmem:[%s6216_s6 + $0xf0] sm:$0xff] }
 0x865   :  { %4952 = vrsqrt.f32 %v1647_v43  ;;  %v1914_v43 = vld [vmem:[%s6216_s6 + $0xf8] sm:$0xff] }
 0x86b   :  { %v4951_v61 = vpop.eup %4950 }
 0x86c   :  { %v1650_v50 = vmul.f32 %v4951_v61, %v1634_v0  ;;  %v1885_v0 = vld [vmem:[%s6216_s6 + $0x10] sm:$0xff]  ;;  %v4785_v61 = vpack.c.bf16 %v1914_v43, %v1913_v42 }
 0x86d   :  { %v4763_v9 = vpack.c.bf16 %v1886_v8, %v1885_v0 }
 0x86e   :  { %v1656_v52 = vmul.f32 %v1655_v63, %v1650_v50  ;;  %v1898_v50 = vld [vmem:[%s6216_s6 + $0x78] sm:$0xff] }
 0x86f   :  { %v4953_v53 = vpop.eup %4952 }
 0x870   :  { %v1662_v55 = vadd.f32 %v1661_v51, %v1656_v52  ;;  %v1651_v56 = vmul.f32 %v4953_v53, %v1635_v1  ;;  %v4761_v1 = vpack.c.bf16 %v1902_v7, %v1901_v6  ;;  %v1680_v52 = vld [vmem:[%s6215_s5] ss:$2 sm:$0x3] }
 0x871   :  { %v1685_v53 = vrot.slane %v1680_v52, %v5192_v47 }
 0x872   :  { %4239 = vmatmul.mubr.msk.f32.vlgmr.msra.gmra.mrb[16].mxu0 %vm42_vm0, %v1662_v55  ;;  %v1657_v57 = vmul.f32 %v1655_v63, %v1651_v56  ;;  %4762 = vmatprep.subr.bf16.mxu1 %v4761_v1  ;;  %v1897_v63 = vld [vmem:[%s6216_s6 + $0x70] sm:$0xff]  ;;  %v1689_v55 = vrot.slane %v1680_v52, %v5200_v49 }
 0x873   :  { %1768 = vmatprep.mubr.f32.mxu0 %v5056_v33  ;;  %4764 = vmatpush3.bf16.msra.mxu1 %v4763_v9 }
 0x874   :  { %v1663_v58 = vadd.f32 %v1661_v51, %v1657_v57  ;;  %4766 = vmatprep.subr.bf16.mxu1 %v4765_v12  ;;  %v4787_v51 = vpack.c.bf16 %v1898_v50, %v1897_v63 }
 0x876   :  { %4240 = vmatmul.mubr.msk.f32.gmra.mrb[18].mxu0 %vm42_vm0, %v1663_v58 }
 0x877   :  { %2125 = vmatprep.mubr.f32.mxu0 %v5056_v33  ;;  %4768 = vmatpush3.bf16.msra.mxu1 %v4767_v15 }
 0x878   :  { %4770 = vmatprep.subr.bf16.mxu1 %v4769_v19 }
 0x87b   :  { %4772 = vmatpush3.bf16.msra.mxu1 %v4771_v22 }
 0x87c   :  { %4774 = vmatprep.subr.bf16.mxu1 %v4773_v25 }
 0x87f   :  { %4776 = vmatpush3.bf16.msra.mxu1 %v4775_v28 }
 0x880   :  { %4778 = vmatprep.subr.bf16.mxu1 %v4777_v31 }
 0x883   :  { %4780 = vmatpush3.bf16.msra.mxu1 %v4779_v35 }
 0x884   :  { %4782 = vmatprep.subr.bf16.mxu1 %v4781_v38 }
 0x887   :  { %4784 = vmatpush3.bf16.msra.mxu1 %v4783_v41 }
 0x888   :  { %4786 = vmatprep.subr.bf16.mxu1 %v4785_v61 }
 0x88b   :  { %4788 = vmatpush3.bf16.msra.mxu1 %v4787_v51 }
 0x88c   :  { %4630 = vmatprep.subr.mxu1 %v5056_v33 }
 0x945   :  { %v1764_v56 = vpop.f32.mrb[16].mxu0 }
 0x946   :  { %v5570_v57 = vadd.f32 %v1764_v56, %v1685_v53  ;;  %v1766_v58 = vpop.f32.mrb[17].mxu0 }
 0x947   :  { %v5572_v59 = vadd.f32 %v1766_v58, %v1689_v55 }
 0x948   :  { %v5575_v48 = vmul.f32 0.70710677, %v5570_v57 }
 0x949   :  { %v5578_v2 = vmul.f32 0.70710677, %v5572_v59  ;;  %v1770_v3 = vpop.f32.mrb[18].mxu0 }
 0x94a   :  { %v1791_v4 = vand.u32 2147483647, %v5575_v48  ;;  %v5581_v5 = vadd.f32 %v1770_v3, %v1685_v53  ;;  %v1772_v6 = vpop.f32.mrb[19].mxu0  ;;  %vm1783_vm7 = vcmp.ge.f32.partialorder %v5575_v48, 0.0 }
 0x94b   :  { %v1792_v7 = vand.u32 2147483647, %v5578_v2  ;;  %v5584_v1 = vadd.f32 %v1772_v6, %v1689_v55  ;;  %vm1784_vm8 = vcmp.ge.f32.partialorder %v5578_v2, 0.0 }
 0x94c   :  { %v1795_v0 = vmul.f32 0.3275911, %v1791_v4  ;;  %v5587_v9 = vmul.f32 0.70710677, %v5581_v5  ;;  %v1847_v19 = vsub.f32 0.0, %v1791_v4 }
 0x94d   :  { %v1796_v8 = vmul.f32 0.3275911, %v1792_v7  ;;  %v5590_v11 = vmul.f32 0.70710677, %v5584_v1  ;;  %v1848_v21 = vsub.f32 0.0, %v1792_v7 }
 0x94e   :  { %v1799_v10 = vadd.f32 1.0, %v1795_v0  ;;  %v1793_v13 = vand.u32 2147483647, %v5587_v9  ;;  %v1851_v23 = vmul.f32 %v1847_v19, %v1791_v4  ;;  %vm1785_vm9 = vcmp.ge.f32.partialorder %v5587_v9, 0.0 }
 0x94f   :  { %v1800_v12 = vadd.f32 1.0, %v1796_v8  ;;  %v1794_v15 = vand.u32 2147483647, %v5590_v11  ;;  %v1852_v26 = vmul.f32 %v1848_v21, %v1792_v7  ;;  %vm1786_vm10 = vcmp.ge.f32.partialorder %v5590_v11, 0.0 }
 0x950   :  { %4954 = vrcp.f32 %v1799_v10  ;;  %v1797_v14 = vmul.f32 0.3275911, %v1793_v13  ;;  %v1849_v27 = vsub.f32 0.0, %v1793_v13  ;;  %v1855_v30 = vmul.f32 1.442695, %v1851_v23 }
 0x951   :  { %4956 = vrcp.f32 %v1800_v12  ;;  %v1798_v17 = vmul.f32 0.3275911, %v1794_v15  ;;  %v1850_v31 = vsub.f32 0.0, %v1794_v15  ;;  %v1857_v36 = vmul.f32 1.442695, %v1852_v26 }
 0x952   :  { %v1801_v16 = vadd.f32 1.0, %v1797_v14  ;;  %v1853_v37 = vmul.f32 %v1849_v27, %v1793_v13  ;;  %v1994_v11 = vsub.s32 5, %v5189_v45 }
 0x953   :  { %v1802_v20 = vadd.f32 1.0, %v1798_v17  ;;  %v1854_v42 = vmul.f32 %v1850_v31, %v1794_v15 }
 0x954   :  { %4958 = vrcp.f32 %v1801_v16  ;;  %v1859_v50 = vmul.f32 1.442695, %v1853_v37 }
 0x955   :  { %4960 = vrcp.f32 %v1802_v20  ;;  %v1861_v58 = vmul.f32 1.442695, %v1854_v42  ;;  %v1776_v42 = vmul.f32 0.5, %v5572_v59  ;;  %v1778_v59 = vmul.f32 0.5, %v5584_v1 }
 0x956   :  { %4962 = vpow2.f32 %v1855_v30  ;;  %v5066_v30 = vmov -1.0  }
 0x957   :  { %4964 = vpow2.f32 %v1857_v36  ;;  %v1787_v31 = vsel %vm1783_vm7, 1.0, %v5066_v30 }
 0x958   :  { %4966 = vpow2.f32 %v1859_v50 }
 0x959   :  { %4968 = vpow2.f32 %v1861_v58 }
 0x95a   :  { %v4955_v22 = vpop.eup %4954 }
 0x95b   :  { %v4957_v24 = vpop.eup %4956  ;;  %v1811_v25 = vmul.f32 1.0614054, %v4955_v22 }
 0x95c   :  { %v1812_v28 = vmul.f32 1.0614054, %v4957_v24 }
 0x95d   :  { %v1815_v29 = vadd.f32 -1.4531521, %v1811_v25 }
 0x95e   :  { %v1816_v32 = vadd.f32 -1.4531521, %v1812_v28  ;;  %v4959_v34 = vpop.eup %4958 }
 0x95f   :  { %v1819_v35 = vmul.f32 %v4955_v22, %v1815_v29  ;;  %v1813_v39 = vmul.f32 1.0614054, %v4959_v34  ;;  %v4961_v41 = vpop.eup %4960 }
 0x960   :  { %v1820_v38 = vmul.f32 %v4957_v24, %v1816_v32  ;;  %v1814_v51 = vmul.f32 1.0614054, %v4961_v41  ;;  %v4963_v17 = vpop.eup %4962 }
 0x961   :  { %v1823_v40 = vadd.f32 1.4214138, %v1819_v35  ;;  %v1817_v63 = vadd.f32 -1.4531521, %v1813_v39  ;;  %v4965_v21 = vpop.eup %4964 }
 0x962   :  { %v1824_v43 = vadd.f32 1.4214138, %v1820_v38  ;;  %v1818_v56 = vadd.f32 -1.4531521, %v1814_v51  ;;  %v4967_v35 = vpop.eup %4966 }
 0x963   :  { %v1827_v61 = vmul.f32 %v4955_v22, %v1823_v40  ;;  %v1821_v53 = vmul.f32 %v4959_v34, %v1817_v63  ;;  %v4969_v40 = vpop.eup %4968 }
 0x964   :  { %v1828_v52 = vmul.f32 %v4957_v24, %v1824_v43  ;;  %v1822_v7 = vmul.f32 %v4961_v41, %v1818_v56 }
 0x965   :  { %v1831_v55 = vadd.f32 -0.28449672, %v1827_v61  ;;  %v1825_v4 = vadd.f32 1.4214138, %v1821_v53  ;;  %v1775_v61 = vmul.f32 0.5, %v5570_v57  ;;  %v1777_v57 = vmul.f32 0.5, %v5581_v5 }
 0x966   :  { %v1832_v3 = vadd.f32 -0.28449672, %v1828_v52  ;;  %v1826_v12 = vadd.f32 1.4214138, %v1822_v7 }
 0x967   :  { %v1835_v6 = vmul.f32 %v4955_v22, %v1831_v55  ;;  %v1829_v8 = vmul.f32 %v4959_v34, %v1825_v4  ;;  %v1790_v55 = vsel %vm1786_vm10, 1.0, %v5066_v30 }
 0x968   :  { %v1836_v0 = vmul.f32 %v4957_v24, %v1832_v3  ;;  %v1830_v16 = vmul.f32 %v4961_v41, %v1826_v12 }
 0x969   :  { %v1839_v10 = vadd.f32 0.2548296, %v1835_v6  ;;  %v1833_v14 = vadd.f32 -0.28449672, %v1829_v8  ;;  %v5030_v8 = vld [vmem:[%s6213_s3] sm:$0x3f] }
 0x96a   :  { %v1840_v13 = vadd.f32 0.2548296, %v1836_v0  ;;  %v1834_v25 = vadd.f32 -0.28449672, %v1830_v16  ;;  %v1995_v1 = vrot.slane %v5030_v8, %v1994_v11 }
 0x96b   :  { %v1843_v15 = vmul.f32 %v4955_v22, %v1839_v10  ;;  %v1837_v20 = vmul.f32 %v4959_v34, %v1833_v14 }
 0x96c   :  { %v1844_v19 = vmul.f32 %v4957_v24, %v1840_v13  ;;  %v1838_v29 = vmul.f32 %v4961_v41, %v1834_v25  ;;  %v1788_v24 = vsel %vm1784_vm8, 1.0, %v5066_v30 }
 0x96d   :  { %v1863_v23 = vmul.f32 %v4963_v17, %v1843_v15  ;;  %v1841_v27 = vadd.f32 0.2548296, %v1837_v20 }
 0x96e   :  { %v1864_v26 = vmul.f32 %v4965_v21, %v1844_v19  ;;  %v1842_v37 = vadd.f32 0.2548296, %v1838_v29 }
 0x96f   :  { %v1867_v28 = vsub.f32 1.0, %v1863_v23  ;;  %v1845_v22 = vmul.f32 %v4959_v34, %v1841_v27  ;;  %v1789_v34 = vsel %vm1785_vm9, 1.0, %v5066_v30 }
 0x970   :  { %v1868_v32 = vsub.f32 1.0, %v1864_v26  ;;  %v1846_v2 = vmul.f32 %v4961_v41, %v1842_v37  ;;  %v4247_v37 = vld [vmem:[%s6211_s1 + $0xa8] sm:$0xff] }
 0x971   :  { %v1871_v36 = vmul.f32 %v1867_v28, %v1787_v31  ;;  %v1865_v38 = vmul.f32 %v4967_v35, %v1845_v22  ;;  %v4243_v31 = vld [vmem:[%s6211_s1 + $0x88] sm:$0xff]  ;;  %v4242_v35 = vld [vmem:[%s6211_s1 + $0x80] sm:$0xff] }
 0x972   :  { %v1872_v48 = vmul.f32 %v1868_v32, %v1788_v24  ;;  %v1866_v50 = vmul.f32 %v4969_v40, %v1846_v2  ;;  %v4245_v32 = vld [vmem:[%s6211_s1 + $0x98] sm:$0xff]  ;;  %v4248_v2 = vld [vmem:[%s6211_s1 + $0xb0] sm:$0xff] }
 0x973   :  { %v1875_v39 = vadd.f32 1.0, %v1871_v36  ;;  %v1869_v63 = vsub.f32 1.0, %v1865_v38  ;;  %v4789_v22 = vpack.c.bf16 %v4245_v32, %v4243_v31  ;;  %v4244_v36 = vld [vmem:[%s6211_s1 + $0x90] sm:$0xff] }
 0x974   :  { %v1876_v43 = vadd.f32 1.0, %v1872_v48  ;;  %v1870_v9 = vsub.f32 1.0, %v1866_v50  ;;  %v4791_v24 = vpack.c.bf16 %v4244_v36, %v4242_v35  ;;  %v4249_v48 = vld [vmem:[%s6211_s1 + $0xb8] sm:$0xff] }
 0x975   :  { %v1873_v52 = vmul.f32 %v1869_v63, %v1789_v34  ;;  %v1879_v53 = vmul.f32 %v1875_v39, %v1775_v61  ;;  %4790 = vmatprep.subr.bf16.mxu0 %v4789_v22  ;;  %v4793_v38 = vpack.c.bf16 %v4249_v48, %v4247_v37  ;;  %v4246_v39 = vld [vmem:[%s6211_s1 + $0xa0] sm:$0xff]  ;;  %v4252_v34 = vld [vmem:[%s6211_s1 + $0xd0] sm:$0xff] }
 0x976   :  { %v1880_v51 = vmul.f32 %v1876_v43, %v1776_v42  ;;  %v1874_v41 = vmul.f32 %v1870_v9, %v1790_v55  ;;  %4792 = vmatpush1.bf16.msra.mxu0 %v4791_v24  ;;  %v4795_v40 = vpack.c.bf16 %v4248_v2, %v4246_v39  ;;  %v4251_v42 = vld [vmem:[%s6211_s1 + $0xc8] sm:$0xff]  ;;  %v4253_v43 = vld [vmem:[%s6211_s1 + $0xd8] sm:$0xff]  ;;  %v4250_v61 = vld [vmem:[%s6211_s1 + $0xc0] sm:$0xff] }
 0x977   :  { %v1877_v56 = vadd.f32 1.0, %v1873_v52  ;;  %4794 = vmatprep.subr.bf16.mxu0 %v4793_v38  ;;  %v4797_v63 = vpack.c.bf16 %v4253_v43, %v4251_v42  ;;  %v4799_v50 = vpack.c.bf16 %v4252_v34, %v4250_v61  ;;  %v4257_v52 = vld [vmem:[%s6211_s1 + $0xf8] sm:$0xff]  ;;  %v4254_v9 = vld [vmem:[%s6211_s1 + $0xe0] sm:$0xff]  ;;  %v4256_v55 = vld [vmem:[%s6211_s1 + $0xf0] sm:$0xff] }
 0x978   :  { %1979 = vmatprep.mubr.f32.mxu1 %v1880_v51  ;;  %v1878_v58 = vadd.f32 1.0, %v1874_v41  ;;  %v4255_v51 = vld [vmem:[%s6211_s1 + $0xe8] sm:$0xff]  ;;  %v4803_v41 = vpack.c.bf16 %v4256_v55, %v4254_v9 }
 0x979   :  { %1980 = vmatmul.mubr.f32.vlgmr.msra.gmra.mrb[22].mxu1 %v1879_v53  ;;  %v1881_v4 = vmul.f32 %v1877_v56, %v1777_v57  ;;  %v4801_v53 = vpack.c.bf16 %v4257_v52, %v4255_v51 }
 0x97a   :  { %v1882_v3 = vmul.f32 %v1878_v58, %v1778_v59  ;;  %4796 = vmatpush1.bf16.msra.mxu0 %v4795_v40 }
 0x97b   :  { %4798 = vmatprep.subr.bf16.mxu0 %v4797_v63 }
 0x97c   :  { %1984 = vmatprep.mubr.f32.mxu1 %v1882_v3 }
 0x97d   :  { %1985 = vmatmul.mubr.f32.gmra.mrb[24].mxu1 %v1881_v4 }
 0x97e   :  { %4632 = vmatprep.mubr.msk.f32.mxu1 %vm5057_vm1, %v5056_v33  ;;  %4800 = vmatpush1.bf16.msra.mxu0 %v4799_v50 }
 0x97f   :  { %4802 = vmatprep.subr.bf16.mxu0 %v4801_v53 }
 0x982   :  { %4804 = vmatpush1.bf16.msra.mxu0 %v4803_v41 }
 0x983   :  { %4610 = vmatprep.subr.mxu0 %v5056_v33 }
 0xa4c   :  { %v4425_v6 = vpop.f32.mrb[22].mxu1 }
 0xa4d   :  { %v4426_v7 = vpop.f32.mrb[23].mxu1 }
 0xa4e   :  { %v4427_v0 = vadd.f32 %v4426_v7, %v4425_v6  ;;  %v5680_v6 = vld [vmem:[%s6213_s3 + $0x8] sm:$0x3f] }
 0xa4f   :  { %v2029_v7 = vrot.slane %v5680_v6, %v5192_v47  ;;  %v2035_v8 = vrot.slane %v5680_v6, %v5200_v49 }
 0xa50   :  { %v1990_v5 = vadd.f32 %v4427_v0, %v5398_v62  ;;  %v4428_v12 = vpop.f32.mrb[24].mxu1 }
 0xa51   :  { %v4429_v13 = vpop.f32.mrb[25].mxu1 }
 0xa52   :  { %v5615_v10 = vadd.f32 %v1995_v1, %v1990_v5  ;;  %v4430_v15 = vadd.f32 %v4429_v13, %v4428_v12 }
 0xa54   :  { %v2000_v14 = vsel %vm42_vm0, %v5615_v10, 0.0  ;;  %v1991_v16 = vadd.f32 %v4430_v15, %v5396_v60 }
 0xa55   :  { %2001 = vadd.xlane.f32.xlu0 %v2000_v14 }
 0xa56   :  { %v5620_v17 = vadd.f32 %v1995_v1, %v1991_v16 }
 0xa58   :  { %v2003_v19 = vsel %vm42_vm0, %v5620_v17, 0.0 }
 0xa59   :  { %2004 = vadd.xlane.f32.xlu1 %v2003_v19 }
 0xae2   :  { %v2002_v20 = vpop.xlane.xlu0 %2001 }
 0xae3   :  { %v2006_v21 = vmul.f32 0.015625, %v2002_v20 }
 0xae5   :  { %v2008_v62 = vsub.f32 %v5615_v10, %v2006_v21 }
 0xae6   :  { %v2005_v25 = vpop.xlane.xlu1 %2004 }
 0xae7   :  { %v2010_v23 = vmul.f32 %v2008_v62, %v2008_v62  ;;  %v2007_v27 = vmul.f32 0.015625, %v2005_v25 }
 0xae9   :  { %v2012_v26 = vsel %vm42_vm0, %v2010_v23, 0.0  ;;  %v2009_v28 = vsub.f32 %v5620_v17, %v2007_v27 }
 0xaea   :  { %2013 = vadd.xlane.f32.xlu0 %v2012_v26 }
 0xaeb   :  { %v2011_v29 = vmul.f32 %v2009_v28, %v2009_v28 }
 0xaed   :  { %v2015_v60 = vsel %vm42_vm0, %v2011_v29, 0.0 }
 0xaee   :  { %2016 = vadd.xlane.f32.xlu1 %v2015_v60 }
 0xb77   :  { %v2014_v56 = vpop.xlane.xlu0 %2013 }
 0xb78   :  { %v2018_v59 = vmul.f32 0.015625, %v2014_v56 }
 0xb7a   :  { %v2020_v58 = vadd.f32 1e-05, %v2018_v59 }
 0xb7b   :  { %v2017_v57 = vpop.xlane.xlu1 %2016 }
 0xb7c   :  { %4970 = vrsqrt.f32 %v2020_v58  ;;  %v2019_v3 = vmul.f32 0.015625, %v2017_v57 }
 0xb7e   :  { %v2021_v4 = vadd.f32 1e-05, %v2019_v3 }
 0xb80   :  { %4972 = vrsqrt.f32 %v2021_v4 }
 0xb86   :  { %v4971_v0 = vpop.eup %4970 }
 0xb87   :  { %v2024_v1 = vmul.f32 %v4971_v0, %v2008_v62 }
 0xb89   :  { %v2030_v5 = vmul.f32 %v2029_v7, %v2024_v1 }
 0xb8a   :  { %v4973_v13 = vpop.eup %4972 }
 0xb8b   :  { %v2036_v12 = vadd.f32 %v2035_v8, %v2030_v5  ;;  %v2025_v14 = vmul.f32 %v4973_v13, %v2009_v28 }
 0xb8d   :  { %4258 = vmatmul.mubr.msk.f32.vlgmr.msra.gmra.mrb[20].mxu0 %vm42_vm0, %v2036_v12  ;;  %v2031_v15 = vmul.f32 %v2029_v7, %v2025_v14 }
 0xb8e   :  { %2131 = vmatprep.mubr.f32.mxu0 %v5056_v33 }
 0xb8f   :  { %v2037_v16 = vadd.f32 %v2035_v8, %v2031_v15 }
 0xb91   :  { %4259 = vmatmul.mubr.msk.f32.gmra.mrb[22].mxu0 %vm42_vm0, %v2037_v16 }
 0xb92   :  { %4612 = vmatprep.mubr.msk.f32.mxu0 %vm5057_vm1, %v5056_v33 }
 0xc60   :  { %v2127_v19 = vpop.f32.mrb[20].mxu0 }
 0xc61   :  { %2144 = vrot.lane.b32.xlu1 %v2127_v19, %s5061_s27  ;;  %2140 = vrot.lane.b32.xlu0 %v2127_v19, %s5058_s24  ;;  %v5693_v20 = vpop.f32.mrb[21].mxu0 }
 0xc64   :  { %v2133_v21 = vpop.f32.mrb[22].mxu0 }
 0xc65   :  { %2148 = vrot.lane.b32.xlu0 %v2127_v19, %s5059_s25  ;;  %2142 = vrot.lane.b32.xlu1 %v2133_v21, %s5058_s24  ;;  %v5697_v62 = vpop.f32.mrb[23].mxu0 }
 0xc69   :  { %2172 = vrot.lane.b32.xlu0 %v2127_v19, %s5060_s26  ;;  %2146 = vrot.lane.b32.xlu1 %v2133_v21, %s5061_s27 }
 0xc6d   :  { %2150 = vrot.lane.b32.xlu1 %v2133_v21, %s5059_s25 }
 0xc71   :  { %2248 = vrot.lane.b32.xlu1 %v2133_v21, %s5060_s26 }
 0xcd3   :  { %v2141_v23 = vpop.permute.xlu0 %2140  ;;  %v2145_v25 = vpop.permute.xlu1 %2144 }
 0xcd4   :  { %2324 = vrot.lane.b32.xlu0 %v2141_v23, %s5060_s26 }
 0xcd7   :  { %v2149_v26 = vpop.permute.xlu0 %2148  ;;  %v2143_v27 = vpop.permute.xlu1 %2142 }
 0xcd8   :  { %2476 = vrot.lane.b32.xlu0 %v2145_v25, %s5060_s26  ;;  %2400 = vrot.lane.b32.xlu1 %v2143_v27, %s5060_s26 }
 0xcdb   :  { %v2173_v28 = vpop.permute.xlu0 %2172  ;;  %v2147_v29 = vpop.permute.xlu1 %2146 }
 0xcdc   :  { %2628 = vrot.lane.b32.xlu0 %v2149_v26, %s5060_s26  ;;  %4611 = vmatpush3.xpose.msk.msra.mxu0 %vm217_vm2, %v2173_v28 }
 0xcdd   :  { %4615 = vmatprep.subr.mxu0 %v5056_v33  ;;  %2552 = vrot.lane.b32.xlu1 %v2147_v29, %s5060_s26 }
 0xcdf   :  { %4613 = vmatmul.mubr.msk.f32.vlgmr.msra.gmra.mrb[24].mxu0 %vm217_vm2, %v2127_v19  ;;  %v2151_v60 = vpop.permute.xlu1 %2150 }
 0xce0   :  { %4617 = vmatprep.mubr.msk.f32.mxu0 %vm5057_vm1, %v5056_v33 }
 0xce1   :  { %2704 = vrot.lane.b32.xlu1 %v2151_v60, %s5060_s26 }
 0xce3   :  { %v2249_v31 = vpop.permute.xlu1 %2248 }
 0xce4   :  { %4616 = vmatpush3.xpose.msk.msra.mxu0 %vm217_vm2, %v2249_v31 }
 0xce5   :  { %4620 = vmatprep.subr.mxu0 %v5056_v33 }
 0xce7   :  { %4618 = vmatmul.mubr.msk.f32.vlgmr.msra.gmra.mrb[26].mxu0 %vm217_vm2, %v2133_v21 }
 0xce8   :  { %4622 = vmatprep.mubr.msk.f32.mxu0 %vm5057_vm1, %v5056_v33 }
 0xd46   :  { %v2325_v32 = vpop.permute.xlu0 %2324 }
 0xd47   :  { %4621 = vmatpush3.xpose.msk.msra.mxu0 %vm217_vm2, %v2325_v32 }
 0xd48   :  { %4625 = vmatprep.subr.mxu0 %v5056_v33 }
 0xd4a   :  { %v2477_v22 = vpop.permute.xlu0 %2476  ;;  %4623 = vmatmul.mubr.msk.f32.vlgmr.msra.gmra.mrb[28].mxu0 %vm217_vm2, %v2141_v23  ;;  %v2401_v35 = vpop.permute.xlu1 %2400 }
 0xd4b   :  { %4631 = vmatpush3.xpose.msk.msra.mxu1 %vm217_vm2, %v2477_v22  ;;  %4627 = vmatprep.mubr.msk.f32.mxu0 %vm5057_vm1, %v5056_v33 }
 0xd4c   :  { %4640 = vmatprep.subr.mxu1 %v5056_v33  ;;  %4626 = vmatpush3.xpose.msk.msra.mxu0 %vm217_vm2, %v2401_v35 }
 0xd4d   :  { %4635 = vmatprep.subr.mxu0 %v5056_v33 }
 0xd4e   :  { %4633 = vmatmul.mubr.msk.f32.vlgmr.msra.gmra.mrb[26].mxu1 %vm217_vm2, %v2145_v25  ;;  %v2629_v36 = vpop.permute.xlu0 %2628 }
 0xd4f   :  { %4641 = vmatpush3.xpose.msk.msra.mxu1 %vm217_vm2, %v2629_v36  ;;  %4642 = vmatprep.mubr.msk.f32.mxu1 %vm5057_vm1, %v5056_v33  ;;  %v2553_v24 = vpop.permute.xlu1 %2552 }
 0xd50   :  { %4650 = vmatprep.subr.mxu1 %v5056_v33  ;;  %4628 = vmatmul.mubr.msk.f32.vlgmr.msra.gmra.mrb[30].mxu0 %vm217_vm2, %v2143_v27 }
 0xd51   :  { %4636 = vmatpush3.xpose.msk.msra.mxu0 %vm217_vm2, %v2553_v24  ;;  %4637 = vmatprep.mubr.msk.f32.mxu0 %vm5057_vm1, %v5056_v33 }
 0xd52   :  { %4643 = vmatmul.mubr.msk.f32.vlgmr.msra.gmra.mrb[28].mxu1 %vm217_vm2, %v2149_v26  ;;  %4645 = vmatprep.subr.mxu0 %v5056_v33 }
 0xd53   :  { %4651 = vmatpush3.msra.mxu1 %v5693_v20  ;;  %4652 = vmatprep.mubr.msk.f32.mxu1 %vm5057_vm1, %v5056_v33  ;;  %v2705_v37 = vpop.permute.xlu1 %2704 }
 0xd54   :  { %4638 = vmatmul.mubr.msk.f32.vlgmr.msra.gmra.mrb[32].mxu0 %vm217_vm2, %v2147_v29  ;;  %4660 = vmatprep.subr.mxu1 %v5056_v33 }
 0xd55   :  { %4646 = vmatpush3.xpose.msk.msra.mxu0 %vm217_vm2, %v2705_v37  ;;  %4647 = vmatprep.mubr.msk.f32.mxu0 %vm5057_vm1, %v5056_v33 }
 0xd56   :  { %4655 = vmatprep.subr.mxu0 %v5056_v33 }
 0xd58   :  { %4648 = vmatmul.mubr.msk.f32.vlgmr.msra.gmra.mrb[34].mxu0 %vm217_vm2, %v2151_v60 }
 0xd59   :  { %4656 = vmatpush3.msra.mxu0 %v5697_v62  ;;  %4657 = vmatprep.mubr.msk.f32.mxu0 %vm5057_vm1, %v5056_v33 }
 0xd5a   :  { %4665 = vmatprep.subr.mxu0 %v5056_v33 }
 0xdb2   :  { %v2244_v48 = vpop.f32.mrb[24].mxu0 }
 0xdb3   :  { %v2245_v38 = vadd.f32 %v2244_v48, %v5277_v18  ;;  %v4614_v39 = vpop.f32.mrb[25].mxu0 }
 0xdb5   :  { %v2780_v2 = vsel %vm824_vm4, %v2245_v38, -inf }
 0xdb6   :  { %2781 = vmax.xlane.f32.xlu0 %v2780_v2 }
 0xdba   :  { %v2320_v40 = vpop.f32.mrb[26].mxu0 }
 0xdbb   :  { %v2321_v42 = vadd.f32 %v2320_v40, %v5277_v18  ;;  %v4619_v43 = vpop.f32.mrb[27].mxu0 }
 0xdbd   :  { %v2783_v63 = vsel %vm824_vm4, %v2321_v42, -inf }
 0xdbe   :  { %2784 = vmax.xlane.f32.xlu1 %v2783_v63 }
 0xe1d   :  { %v2396_v61 = vpop.f32.mrb[28].mxu0 }
 0xe1e   :  { %v2397_v34 = vadd.f32 %v2396_v61, %v5277_v18  ;;  %v4624_v50 = vpop.f32.mrb[29].mxu0 }
 0xe20   :  { %v2786_v51 = vsel %vm824_vm4, %v2397_v34, -inf }
 0xe21   :  { %v2548_v52 = vpop.f32.mrb[26].mxu1  ;;  %2787 = vmax.xlane.f32.xlu0 %v2786_v51 }
 0xe22   :  { %v4634_v53 = vpop.f32.mrb[27].mxu1  ;;  %v2549_v59 = vadd.f32 %v2548_v52, %v5277_v18 }
 0xe23   :  { %v2472_v9 = vpop.f32.mrb[30].mxu0 }
 0xe24   :  { %v2473_v55 = vadd.f32 %v2472_v9, %v5277_v18  ;;  %v4629_v41 = vpop.f32.mrb[31].mxu0  ;;  %v2792_v8 = vsel %vm824_vm4, %v2549_v59, -inf }
 0xe25   :  { %v2700_v56 = vpop.f32.mrb[28].mxu1 }
 0xe26   :  { %v2789_v58 = vsel %vm824_vm4, %v2473_v55, -inf  ;;  %v4644_v57 = vpop.f32.mrb[29].mxu1  ;;  %v2701_v0 = vadd.f32 %v2700_v56, %v5277_v18 }
 0xe27   :  { %2790 = vmax.xlane.f32.xlu0 %v2789_v58  ;;  %v2624_v3 = vpop.f32.mrb[32].mxu0 }
 0xe28   :  { %v2625_v4 = vadd.f32 %v2624_v3, %v5277_v18  ;;  %v4639_v7 = vpop.f32.mrb[33].mxu0  ;;  %v2798_v14 = vsel %vm824_vm4, %v2701_v0, -inf }
 0xe2a   :  { %v2795_v1 = vsel %vm824_vm4, %v2625_v4, -inf }
 0xe2b   :  { %2793 = vmax.xlane.f32.xlu0 %v2792_v8  ;;  %2796 = vmax.xlane.f32.xlu1 %v2795_v1  ;;  %v2776_v5 = vpop.f32.mrb[34].mxu0 }
 0xe2c   :  { %v2777_v12 = vadd.f32 %v2776_v5, %v5277_v18  ;;  %v4649_v13 = vpop.f32.mrb[35].mxu0 }
 0xe2e   :  { %v2801_v15 = vsel %vm824_vm4, %v2777_v12, -inf }
 0xe2f   :  { %2799 = vmax.xlane.f32.xlu0 %v2798_v14  ;;  %2802 = vmax.xlane.f32.xlu1 %v2801_v15 }
 0xe40   :  { %2156 = vrot.lane.b32.xlu1 %v5697_v62, %s5058_s24 }
 0xe43   :  { %v2782_v18 = vpop.xlane.xlu0 %2781 }
 0xe44   :  { %2160 = vrot.lane.b32.xlu1 %v5693_v20, %s5061_s27  ;;  %v2804_v16 = vsub.f32 %v2245_v38, %v2782_v18 }
 0xe45   :  { %2154 = vrot.lane.b32.xlu0 %v5693_v20, %s5058_s24 }
 0xe46   :  { %v2812_v19 = vmul.f32 1.442695, %v2804_v16 }
 0xe48   :  { %2162 = vrot.lane.b32.xlu1 %v5697_v62, %s5061_s27  ;;  %4974 = vpow2.f32 %v2812_v19 }
 0xe4b   :  { %v2785_v21 = vpop.xlane.xlu1 %2784 }
 0xe4c   :  { %v2805_v23 = vsub.f32 %v2321_v42, %v2785_v21 }
 0xe4e   :  { %v2814_v25 = vmul.f32 1.442695, %v2805_v23 }
 0xe50   :  { %4976 = vpow2.f32 %v2814_v25 }
 0xe52   :  { %v4975_v26 = vpop.eup %4974 }
 0xe53   :  { %v2828_v27 = vsel %vm824_vm4, %v4975_v26, 0.0 }
 0xe5a   :  { %v4977_v28 = vpop.eup %4976 }
 0xe5b   :  { %v2831_v29 = vsel %vm824_vm4, %v4977_v28, 0.0 }
 0xe64   :  { %2829 = vadd.xlane.f32.xlu0 %v2828_v27 }
 0xe6c   :  { %2832 = vadd.xlane.f32.xlu1 %v2831_v29 }
 0xeae   :  { %v2788_v60 = vpop.xlane.xlu0 %2787 }
 0xeaf   :  { %v2806_v31 = vsub.f32 %v2397_v34, %v2788_v60 }
 0xeb1   :  { %v2816_v32 = vmul.f32 1.442695, %v2806_v31 }
 0xeb3   :  { %4978 = vpow2.f32 %v2816_v32 }
 0xeb4   :  { %v2791_v22 = vpop.xlane.xlu0 %2790 }
 0xeb5   :  { %v2807_v35 = vsub.f32 %v2473_v55, %v2791_v22 }
 0xeb7   :  { %v2818_v36 = vmul.f32 1.442695, %v2807_v35 }
 0xeb8   :  { %v2794_v24 = vpop.xlane.xlu0 %2793  ;;  %v2797_v37 = vpop.xlane.xlu1 %2796 }
 0xeb9   :  { %4980 = vpow2.f32 %v2818_v36  ;;  %v2808_v48 = vsub.f32 %v2549_v59, %v2794_v24  ;;  %v2809_v38 = vsub.f32 %v2625_v4, %v2797_v37 }
 0xebb   :  { %v2820_v39 = vmul.f32 1.442695, %v2808_v48  ;;  %v2822_v2 = vmul.f32 1.442695, %v2809_v38  ;;  %v4284_v48 = vld [vmem:[%s6212_s2 + $0x40] sm:$0xff]  ;;  %v4285_v38 = vld [vmem:[%s6212_s2 + $0x48] sm:$0xff] }
 0xebc   :  { %v2800_v42 = vpop.xlane.xlu0 %2799  ;;  %v2803_v43 = vpop.xlane.xlu1 %2802 }
 0xebd   :  { %v4979_v40 = vpop.eup %4978  ;;  %4982 = vpow2.f32 %v2820_v39  ;;  %v2810_v63 = vsub.f32 %v2701_v0, %v2800_v42  ;;  %v2811_v61 = vsub.f32 %v2777_v12, %v2803_v43  ;;  %v4805_v39 = vpack.c.bf16 %v4285_v38, %v4284_v48 }
 0xebe   :  { %v2834_v34 = vsel %vm824_vm4, %v4979_v40, 0.0  ;;  %4984 = vpow2.f32 %v2822_v2 }
 0xebf   :  { %2835 = vadd.xlane.f32.xlu0 %v2834_v34  ;;  %v2824_v50 = vmul.f32 1.442695, %v2810_v63  ;;  %v2826_v51 = vmul.f32 1.442695, %v2811_v61  ;;  %v4286_v63 = vld [vmem:[%s6212_s2 + $0x50] sm:$0xff]  ;;  %v4287_v61 = vld [vmem:[%s6212_s2 + $0x58] sm:$0xff] }
 0xec0   :  { %v2157_v4 = vpop.permute.xlu1 %2156  ;;  %v2155_v7 = vpop.permute.xlu0 %2154  ;;  %v4809_v34 = vpack.c.bf16 %v4287_v61, %v4286_v63  ;;  %v4294_v63 = vld [vmem:[%s6214_s4 + $0x80] sm:$0xff]  ;;  %v4296_v61 = vld [vmem:[%s6214_s4 + $0x90] sm:$0xff] }
 0xec1   :  { %4986 = vpow2.f32 %v2824_v50  ;;  %v4288_v50 = vld [vmem:[%s6212_s2 + $0x60] sm:$0xff] }
 0xec2   :  { %4988 = vpow2.f32 %v2826_v51  ;;  %v4289_v51 = vld [vmem:[%s6212_s2 + $0x68] sm:$0xff] }
 0xec3   :  { %v4981_v52 = vpop.eup %4980 }
 0xec4   :  { %v2837_v53 = vsel %vm824_vm4, %v4981_v52, 0.0  ;;  %v2161_v0 = vpop.permute.xlu1 %2160 }
 0xec5   :  { %2838 = vadd.xlane.f32.xlu1 %v2837_v53 }
 0xec7   :  { %v4983_v9 = vpop.eup %4982 }
 0xec8   :  { %v4985_v55 = vpop.eup %4984  ;;  %v2840_v41 = vsel %vm824_vm4, %v4983_v9, 0.0  ;;  %v2163_v1 = vpop.permute.xlu1 %2162 }
 0xec9   :  { %2841 = vadd.xlane.f32.xlu0 %v2840_v41  ;;  %v2843_v56 = vsel %vm824_vm4, %v4985_v55, 0.0 }
 0xeca   :  { %2844 = vadd.xlane.f32.xlu1 %v2843_v56 }
 0xecb   :  { %v5783_v59 = vpop.eup %4986 }
 0xecc   :  { %v5785_v58 = vpop.eup %4988  ;;  %v2846_v57 = vsel %vm824_vm4, %v5783_v59, 0.0 }
 0xecd   :  { %2847 = vadd.xlane.f32.xlu0 %v2846_v57  ;;  %v2849_v3 = vsel %vm824_vm4, %v5785_v58, 0.0 }
 0xece   :  { %2850 = vadd.xlane.f32.xlu1 %v2849_v3 }
 0xedf   :  { %2168 = vrot.lane.b32.xlu1 %v5697_v62, %s5059_s25 }
 0xee3   :  { %2166 = vrot.lane.b32.xlu0 %v5693_v20, %s5059_s25 }
 0xef1   :  { %v2830_v8 = vpop.xlane.xlu0 %2829 }
 0xef2   :  { %4990 = vrcp.f32 %v2830_v8 }
 0xef9   :  { %v2833_v5 = vpop.xlane.xlu1 %2832 }
 0xefa   :  { %4992 = vrcp.f32 %v2833_v5 }
 0xefc   :  { %v4991_v12 = vpop.eup %4990 }
 0xefd   :  { %v2853_v13 = vmul.f32 %v4991_v12, %v4975_v26 }
 0xeff   :  { %4653 = vmatmul.mubr.msk.f32.vlgmr.msra.gmra.mrb[30].mxu1 %vm824_vm4, %v2853_v13 }
 0xf00   :  { %4661 = vmatpush3.msra.mxu1 %v2155_v7  ;;  %4662 = vmatprep.mubr.msk.f32.mxu1 %vm5057_vm1, %v5056_v33 }
 0xf01   :  { %4670 = vmatprep.subr.mxu1 %v5056_v33 }
 0xf04   :  { %v4993_v62 = vpop.eup %4992 }
 0xf05   :  { %v2855_v20 = vmul.f32 %v4993_v62, %v4977_v28 }
 0xf07   :  { %4658 = vmatmul.mubr.msk.f32.vlgmr.msra.gmra.mrb[36].mxu0 %vm824_vm4, %v2855_v20 }
 0xf08   :  { %4666 = vmatpush3.msra.mxu0 %v2157_v4  ;;  %4667 = vmatprep.mubr.msk.f32.mxu0 %vm5057_vm1, %v5056_v33 }
 0xf09   :  { %4675 = vmatprep.subr.mxu0 %v5056_v33 }
 0xf4c   :  { %v2836_v14 = vpop.xlane.xlu0 %2835 }
 0xf4d   :  { %4994 = vrcp.f32 %v2836_v14 }
 0xf52   :  { %v2839_v15 = vpop.xlane.xlu1 %2838 }
 0xf53   :  { %4996 = vrcp.f32 %v2839_v15 }
 0xf56   :  { %v2842_v16 = vpop.xlane.xlu0 %2841 }
 0xf57   :  { %v4995_v18 = vpop.eup %4994  ;;  %4998 = vrcp.f32 %v2842_v16  ;;  %v2845_v21 = vpop.xlane.xlu1 %2844 }
 0xf58   :  { %v2857_v19 = vmul.f32 %v4995_v18, %v4979_v40  ;;  %5000 = vrcp.f32 %v2845_v21 }
 0xf5a   :  { %4663 = vmatmul.mubr.msk.f32.vlgmr.msra.gmra.mrb[32].mxu1 %vm824_vm4, %v2857_v19  ;;  %v2848_v23 = vpop.xlane.xlu0 %2847 }
 0xf5b   :  { %4671 = vmatpush3.msra.mxu1 %v2161_v0  ;;  %4672 = vmatprep.mubr.msk.f32.mxu1 %vm5057_vm1, %v5056_v33  ;;  %5002 = vrcp.f32 %v2848_v23  ;;  %v2851_v25 = vpop.xlane.xlu1 %2850 }
 0xf5c   :  { %4680 = vmatprep.subr.mxu1 %v5056_v33  ;;  %5004 = vrcp.f32 %v2851_v25 }
 0xf5d   :  { %v4997_v26 = vpop.eup %4996 }
 0xf5e   :  { %v2859_v27 = vmul.f32 %v4997_v26, %v4981_v52  ;;  %v2167_v32 = vpop.permute.xlu0 %2166  ;;  %v4813_v52 = vpack.c.bf16 %v4289_v51, %v4288_v50  ;;  %v3577_v26 = vrot.slane %v5680_v6, %v1622_v54  ;;  %v4299_v50 = vld [vmem:[%s6214_s4 + $0xa8] sm:$0xff]  ;;  %v4301_v51 = vld [vmem:[%s6214_s4 + $0xb8] sm:$0xff] }
 0xf5f   :  { %v2169_v35 = vpop.permute.xlu1 %2168 }
 0xf60   :  { %4668 = vmatmul.mubr.msk.f32.vlgmr.msra.gmra.mrb[38].mxu0 %vm824_vm4, %v2859_v27 }
 0xf61   :  { %v4999_v28 = vpop.eup %4998  ;;  %4676 = vmatpush3.msra.mxu0 %v2163_v1  ;;  %4677 = vmatprep.mubr.msk.f32.mxu0 %vm5057_vm1, %v5056_v33 }
 0xf62   :  { %v5001_v29 = vpop.eup %5000  ;;  %v2861_v60 = vmul.f32 %v4999_v28, %v4983_v9  ;;  %4685 = vmatprep.subr.mxu0 %v5056_v33  ;;  %v4290_v9 = vld [vmem:[%s6212_s2 + $0x70] sm:$0xff] }
 0xf63   :  { %v2863_v31 = vmul.f32 %v5001_v29, %v4985_v55  ;;  %v4291_v55 = vld [vmem:[%s6212_s2 + $0x78] sm:$0xff] }
 0xf64   :  { %4673 = vmatmul.mubr.msk.f32.vlgmr.msra.gmra.mrb[34].mxu1 %vm824_vm4, %v2861_v60  ;;  %v4817_v56 = vpack.c.bf16 %v4291_v55, %v4290_v9  ;;  %v4300_v9 = vld [vmem:[%s6214_s4 + $0xb0] sm:$0xff] }
 0xf65   :  { %v5003_v22 = vpop.eup %5002  ;;  %4678 = vmatmul.mubr.msk.f32.vlgmr.msra.gmra.mrb[40].mxu0 %vm824_vm4, %v2863_v31  ;;  %4681 = vmatpush3.msra.mxu1 %v2167_v32 }
 0xf66   :  { %v5005_v36 = vpop.eup %5004  ;;  %v2865_v24 = vmul.f32 %v5003_v22, %v5783_v59  ;;  %4686 = vmatpush3.msra.mxu0 %v2169_v35  ;;  %4682 = vmatprep.mubr.msk.f32.mxu1 %vm5057_vm1, %v5056_v33 }
 0xf67   :  { %v2867_v37 = vmul.f32 %v5005_v36, %v5785_v58  ;;  %4687 = vmatprep.mubr.msk.f32.mxu0 %vm5057_vm1, %v5056_v33  ;;  %4806 = vmatprep.subr.bf16.mxu1 %v4805_v39 }
 0xf68   :  { %4683 = vmatmul.mubr.msk.f32.vlgmr.msra.gmra.mrb[36].mxu1 %vm824_vm4, %v2865_v24 }
 0xf69   :  { %4688 = vmatmul.mubr.msk.f32.vlgmr.msra.gmra.mrb[42].mxu0 %vm824_vm4, %v2867_v37  ;;  %4808 = vmatpush3.bf16.msra.mxu1 %v4805_v39 }
 0xf6a   :  { %3718 = vmatprep.mubr.f32.mxu0 %v5056_v33  ;;  %4810 = vmatprep.subr.bf16.mxu1 %v4809_v34 }
 0xf6d   :  { %4812 = vmatpush3.bf16.msra.mxu1 %v4809_v34  ;;  %v4823_v34 = vpack.c.bf16 %v4296_v61, %v4294_v63  ;;  %v4336_v63 = vld [vmem:[%s6216_s6 + $0x1b8] sm:$0xff] }
 0xf6e   :  { %4814 = vmatprep.subr.bf16.mxu1 %v4813_v52 }
 0xf71   :  { %4816 = vmatpush3.bf16.msra.mxu1 %v4813_v52  ;;  %v4825_v52 = vpack.c.bf16 %v4301_v51, %v4299_v50  ;;  %v4320_v50 = vld [vmem:[%s6216_s6 + $0x138] sm:$0xff] }
 0xf72   :  { %4818 = vmatprep.subr.bf16.mxu1 %v4817_v56 }
 0xf75   :  { %4820 = vmatpush3.bf16.msra.mxu1 %v4817_v56  ;;  %v4305_v56 = vld [vmem:[%s6214_s4 + $0xd8] sm:$0xff] }
 0xfd2   :  { %v2937_v2 = vpop.f32.mrb[30].mxu1 }
 0xfd3   :  { %v4654_v40 = vpop.f32.mrb[31].mxu1 }
 0xfd4   :  { %v4295_v40 = vld [vmem:[%s6214_s4 + $0x88] sm:$0xff] }
 0xfda   :  { %v3010_v42 = vpop.f32.mrb[36].mxu0 }
 0xfdb   :  { %v4659_v43 = vpop.f32.mrb[37].mxu0 }
0x102d   :  { %v3083_v53 = vpop.f32.mrb[32].mxu1 }
0x102e   :  { %3454 = vrot.lane.b32.xlu0 %v3083_v53, %s5063_s22  ;;  %v4664_v41 = vpop.f32.mrb[33].mxu1  ;;  %v4298_v53 = vld [vmem:[%s6214_s4 + $0xa0] sm:$0xff] }
0x102f   :  { %v4827_v55 = vpack.c.bf16 %v4300_v9, %v4298_v53  ;;  %v4303_v41 = vld [vmem:[%s6214_s4 + $0xc8] sm:$0xff] }
0x1030   :  { %v4338_v53 = vld [vmem:[%s6216_s6 + $0x1c8] sm:$0xff] }
0x1033   :  { %v3156_v59 = vpop.f32.mrb[38].mxu0 }
0x1034   :  { %3456 = vrot.lane.b32.xlu1 %v3156_v59, %s5063_s22  ;;  %v4669_v58 = vpop.f32.mrb[39].mxu0  ;;  %v4829_v59 = vpack.c.bf16 %v4305_v56, %v4303_v41  ;;  %v4322_v41 = vld [vmem:[%s6216_s6 + $0x148] sm:$0xff] }
0x1035   :  { %v4302_v58 = vld [vmem:[%s6214_s4 + $0xc0] sm:$0xff] }
0x1037   :  { %v3229_v57 = vpop.f32.mrb[34].mxu1 }
0x1038   :  { %v3302_v3 = vpop.f32.mrb[40].mxu0  ;;  %3462 = vrot.lane.b32.xlu0 %v3229_v57, %s5064_s23  ;;  %v4674_v4 = vpop.f32.mrb[35].mxu1  ;;  %v4304_v57 = vld [vmem:[%s6214_s4 + $0xd0] sm:$0xff] }
0x1039   :  { %3464 = vrot.lane.b32.xlu1 %v3302_v3, %s5064_s23  ;;  %v4679_v7 = vpop.f32.mrb[41].mxu0  ;;  %v4831_v3 = vpack.c.bf16 %v4304_v57, %v4302_v58  ;;  %v4307_v4 = vld [vmem:[%s6214_s4 + $0xe8] sm:$0xff]  ;;  %v4340_v58 = vld [vmem:[%s6216_s6 + $0x1d8] sm:$0xff] }
0x103a   :  { %v4309_v7 = vld [vmem:[%s6214_s4 + $0xf8] sm:$0xff] }
0x103b   :  { %v3375_v0 = vpop.f32.mrb[36].mxu1 }
0x103c   :  { %v3448_v8 = vpop.f32.mrb[42].mxu0  ;;  %3470 = vrot.lane.b32.xlu0 %v3375_v0, %s5065_s28  ;;  %v4684_v1 = vpop.f32.mrb[37].mxu1  ;;  %v4306_v0 = vld [vmem:[%s6214_s4 + $0xe0] sm:$0xff] }
0x103d   :  { %3472 = vrot.lane.b32.xlu1 %v3448_v8, %s5065_s28  ;;  %v4689_v5 = vpop.f32.mrb[43].mxu0  ;;  %v4833_v8 = vpack.c.bf16 %v4309_v7, %v4307_v4  ;;  %v4308_v1 = vld [vmem:[%s6214_s4 + $0xf0] sm:$0xff]  ;;  %v4324_v4 = vld [vmem:[%s6216_s6 + $0x158] sm:$0xff] }
0x103e   :  { %v4835_v5 = vpack.c.bf16 %v4308_v1, %v4306_v0  ;;  %v4341_v0 = vld [vmem:[%s6216_s6 + $0x1e0] sm:$0xff] }
0x10a0   :  { %v3455_v12 = vpop.permute.xlu0 %3454 }
0x10a1   :  { %v3476_v14 = vsel %vm217_vm2, %v2937_v2, %v3455_v12 }
0x10a6   :  { %v3457_v13 = vpop.permute.xlu1 %3456 }
0x10a7   :  { %v3477_v15 = vsel %vm217_vm2, %v3010_v42, %v3457_v13  ;;  %v4297_v42 = vld [vmem:[%s6214_s4 + $0x98] sm:$0xff] }
0x10a8   :  { %v4821_v43 = vpack.c.bf16 %v4297_v42, %v4295_v40  ;;  %v4318_v40 = vld [vmem:[%s6216_s6 + $0x128] sm:$0xff] }
0x10aa   :  { %v3463_v62 = vpop.permute.xlu0 %3462  ;;  %4822 = vmatprep.subr.bf16.mxu0 %v4821_v43  ;;  %v4335_v43 = vld [vmem:[%s6216_s6 + $0x1b0] sm:$0xff] }
0x10ab   :  { %v3465_v20 = vpop.permute.xlu1 %3464  ;;  %v3478_v18 = vsel %vm1523_vm5, %v3476_v14, %v3463_v62  ;;  %4824 = vmatpush1.bf16.msra.mxu0 %v4823_v34  ;;  %v4849_v61 = vpack.c.bf16 %v4336_v63, %v4335_v43  ;;  %v4319_v34 = vld [vmem:[%s6216_s6 + $0x130] sm:$0xff] }
0x10ac   :  { %v3479_v19 = vsel %vm1523_vm5, %v3477_v15, %v3465_v20  ;;  %4826 = vmatprep.subr.bf16.mxu0 %v4825_v52  ;;  %v4851_v51 = vpack.c.bf16 %v4320_v50, %v4319_v34  ;;  %v4337_v52 = vld [vmem:[%s6216_s6 + $0x1c0] sm:$0xff] }
0x10ad   :  { %v4853_v9 = vpack.c.bf16 %v4338_v53, %v4337_v52 }
0x10ae   :  { %v3471_v16 = vpop.permute.xlu0 %3470 }
0x10af   :  { %v3480_v21 = vsel %vm1526_vm6, %v3478_v18, %v3471_v16  ;;  %v3473_v23 = vpop.permute.xlu1 %3472  ;;  %4828 = vmatpush1.bf16.msra.mxu0 %v4827_v55  ;;  %v3609_v18 = vrot.slane %v5680_v6, %v1654_v44  ;;  %v4329_v44 = vld [vmem:[%s6216_s6 + $0x180] sm:$0xff] }
0x10b0   :  { %v3481_v25 = vsel %vm1526_vm6, %v3479_v19, %v3473_v23  ;;  %4706 = vmatprep.mubr.msk.f32.mxu1 %vm42_vm0, %v3480_v21  ;;  %4830 = vmatprep.subr.bf16.mxu0 %v4829_v59  ;;  %v3615_v21 = vrot.slane %v5680_v6, %v1660_v46  ;;  %v4330_v46 = vld [vmem:[%s6216_s6 + $0x188] sm:$0xff]  ;;  %v4321_v55 = vld [vmem:[%s6216_s6 + $0x140] sm:$0xff]  ;;  %v4339_v59 = vld [vmem:[%s6216_s6 + $0x1d0] sm:$0xff] }
0x10b1   :  { %4707 = vmatmul.mubr.msk.f32.vlgmr.msra.gmra.mrb[38].mxu1 %vm42_vm0, %v3481_v25  ;;  %v4837_v6 = vpack.c.bf16 %v4330_v46, %v4329_v44  ;;  %v4855_v56 = vpack.c.bf16 %v4322_v41, %v4321_v55  ;;  %v4857_v57 = vpack.c.bf16 %v4340_v58, %v4339_v59 }
0x10b3   :  { %4832 = vmatpush1.bf16.msra.mxu0 %v4831_v3  ;;  %4838 = vmatprep.subr.bf16.mxu1 %v4837_v6  ;;  %v4323_v3 = vld [vmem:[%s6216_s6 + $0x150] sm:$0xff] }
0x10b4   :  { %4834 = vmatprep.subr.bf16.mxu0 %v4833_v8  ;;  %v4859_v7 = vpack.c.bf16 %v4324_v4, %v4323_v3  ;;  %v4342_v8 = vld [vmem:[%s6216_s6 + $0x1e8] sm:$0xff] }
0x10b5   :  { %v4861_v1 = vpack.c.bf16 %v4342_v8, %v4341_v0 }
0x10b7   :  { %4836 = vmatpush1.bf16.msra.mxu0 %v4835_v5  ;;  %v4325_v5 = vld [vmem:[%s6216_s6 + $0x160] sm:$0xff] }
0x1184   :  { %v4708_v27 = vpop.f32.mrb[38].mxu1 }
0x1185   :  { %v3573_v28 = vadd.f32 %v4708_v27, %v5620_v17  ;;  %v3563_v29 = vpop.f32.mrb[39].mxu1 }
0x1186   :  { %v3572_v60 = vadd.f32 %v3563_v29, %v5615_v10 }
0x1187   :  { %v5865_v31 = vadd.f32 %v3577_v26, %v3573_v28 }
0x1188   :  { %v5867_v32 = vadd.f32 %v3577_v26, %v3572_v60  ;;  %v4313_v60 = vld [vmem:[%s6216_s6 + $0x100] sm:$0xff] }
0x1189   :  { %v3583_v22 = vsel %vm42_vm0, %v5865_v31, 0.0 }
0x118a   :  { %3584 = vadd.xlane.f32.xlu1 %v3583_v22  ;;  %v3580_v35 = vsel %vm42_vm0, %v5867_v32, 0.0  ;;  %v4314_v22 = vld [vmem:[%s6216_s6 + $0x108] sm:$0xff] }
0x118b   :  { %3581 = vadd.xlane.f32.xlu0 %v3580_v35  ;;  %v4839_v35 = vpack.c.bf16 %v4314_v22, %v4313_v60 }
0x118d   :  { %4840 = vmatpush3.bf16.msra.mxu1 %v4839_v35 }
0x1217   :  { %v3585_v36 = vpop.xlane.xlu1 %3584 }
0x1218   :  { %v3587_v54 = vmul.f32 0.015625, %v3585_v36  ;;  %v3582_v24 = vpop.xlane.xlu0 %3581  ;;  %v4331_v36 = vld [vmem:[%s6216_s6 + $0x190] sm:$0xff] }
0x1219   :  { %v3586_v37 = vmul.f32 0.015625, %v3582_v24 }
0x121a   :  { %v3589_v17 = vsub.f32 %v5865_v31, %v3587_v54  ;;  %v4332_v54 = vld [vmem:[%s6216_s6 + $0x198] sm:$0xff] }
0x121b   :  { %v3588_v10 = vsub.f32 %v5867_v32, %v3586_v37  ;;  %v4841_v24 = vpack.c.bf16 %v4332_v54, %v4331_v36  ;;  %v4315_v37 = vld [vmem:[%s6216_s6 + $0x110] sm:$0xff] }
0x121c   :  { %v3591_v39 = vmul.f32 %v3589_v17, %v3589_v17 }
0x121d   :  { %v3590_v48 = vmul.f32 %v3588_v10, %v3588_v10  ;;  %4842 = vmatprep.subr.bf16.mxu1 %v4841_v24 }
0x121e   :  { %v3595_v2 = vsel %vm42_vm0, %v3591_v39, 0.0 }
0x121f   :  { %v3592_v38 = vsel %vm42_vm0, %v3590_v48, 0.0  ;;  %v4333_v48 = vld [vmem:[%s6216_s6 + $0x1a0] sm:$0xff] }
0x1220   :  { %3593 = vadd.xlane.f32.xlu0 %v3592_v38  ;;  %v4334_v38 = vld [vmem:[%s6216_s6 + $0x1a8] sm:$0xff] }
0x1221   :  { %v4845_v39 = vpack.c.bf16 %v4334_v38, %v4333_v48 }
0x1224   :  { %3596 = vadd.xlane.f32.xlu0 %v3595_v2  ;;  %v4317_v2 = vld [vmem:[%s6216_s6 + $0x120] sm:$0xff] }
0x1225   :  { %v4847_v42 = vpack.c.bf16 %v4318_v40, %v4317_v2 }
0x12ad   :  { %v3594_v12 = vpop.xlane.xlu0 %3593 }
0x12ae   :  { %v3598_v13 = vmul.f32 0.015625, %v3594_v12  ;;  %v4326_v12 = vld [vmem:[%s6216_s6 + $0x168] sm:$0xff] }
0x12b0   :  { %v3600_v62 = vadd.f32 1e-05, %v3598_v13  ;;  %v4863_v13 = vpack.c.bf16 %v4326_v12, %v4325_v5 }
0x12b1   :  { %v3597_v20 = vpop.xlane.xlu0 %3596 }
0x12b2   :  { %5006 = vrsqrt.f32 %v3600_v62  ;;  %v3599_v14 = vmul.f32 0.015625, %v3597_v20  ;;  %v4343_v62 = vld [vmem:[%s6216_s6 + $0x1f0] sm:$0xff]  ;;  %v4344_v20 = vld [vmem:[%s6216_s6 + $0x1f8] sm:$0xff] }
0x12b4   :  { %v3601_v15 = vadd.f32 1e-05, %v3599_v14  ;;  %v4327_v14 = vld [vmem:[%s6216_s6 + $0x170] sm:$0xff] }
0x12b6   :  { %5008 = vrsqrt.f32 %v3601_v15  ;;  %v4865_v15 = vpack.c.bf16 %v4344_v20, %v4343_v62 }
0x12bc   :  { %v5007_v16 = vpop.eup %5006 }
0x12bd   :  { %v3604_v19 = vmul.f32 %v5007_v16, %v3588_v10 }
0x12bf   :  { %v3610_v23 = vmul.f32 %v3609_v18, %v3604_v19  ;;  %v4310_v19 = vld [vmem:[%s6215_s5 + $0x1] ss:$2 sm:$0x3] }
0x12c0   :  { %v5009_v25 = vpop.eup %5008 }
0x12c1   :  { %v3616_v26 = vadd.f32 %v3615_v21, %v3610_v23  ;;  %v3605_v27 = vmul.f32 %v5009_v25, %v3589_v17  ;;  %v4316_v17 = vld [vmem:[%s6216_s6 + $0x118] sm:$0xff]  ;;  %v3645_v23 = vrot.slane %v4310_v19, %v5200_v49 }
0x12c2   :  { %v4843_v10 = vpack.c.bf16 %v4316_v17, %v4315_v37 }
0x12c3   :  { %4311 = vmatmul.mubr.msk.f32.vlgmr.msra.gmra.mrb[44].mxu0 %vm42_vm0, %v3616_v26  ;;  %v3611_v28 = vmul.f32 %v3609_v18, %v3605_v27  ;;  %v4328_v18 = vld [vmem:[%s6216_s6 + $0x178] sm:$0xff] }
0x12c4   :  { %3724 = vmatprep.mubr.f32.mxu0 %v5056_v33  ;;  %4844 = vmatpush3.bf16.msra.mxu1 %v4843_v10  ;;  %v4867_v16 = vpack.c.bf16 %v4328_v18, %v4327_v14 }
0x12c5   :  { %v3617_v29 = vadd.f32 %v3615_v21, %v3611_v28  ;;  %4846 = vmatprep.subr.bf16.mxu1 %v4845_v39  ;;  %v3641_v21 = vrot.slane %v4310_v19, %v5192_v47 }
0x12c7   :  { %4312 = vmatmul.mubr.msk.f32.gmra.mrb[46].mxu0 %vm42_vm0, %v3617_v29 }
0x12c8   :  { %4097 = vmatprep.mubr.f32.mxu0 %v5056_v33  ;;  %4848 = vmatpush3.bf16.msra.mxu1 %v4847_v42 }
0x12c9   :  { %4850 = vmatprep.subr.bf16.mxu1 %v4849_v61 }
0x12cc   :  { %4852 = vmatpush3.bf16.msra.mxu1 %v4851_v51 }
0x12cd   :  { %4854 = vmatprep.subr.bf16.mxu1 %v4853_v9 }
0x12d0   :  { %4856 = vmatpush3.bf16.msra.mxu1 %v4855_v56 }
0x12d1   :  { %4858 = vmatprep.subr.bf16.mxu1 %v4857_v57 }
0x12d4   :  { %4860 = vmatpush3.bf16.msra.mxu1 %v4859_v7 }
0x12d5   :  { %4862 = vmatprep.subr.bf16.mxu1 %v4861_v1 }
0x12d8   :  { %4864 = vmatpush3.bf16.msra.mxu1 %v4863_v13 }
0x12d9   :  { %4866 = vmatprep.subr.bf16.mxu1 %v4865_v15 }
0x12dc   :  { %4868 = vmatpush3.bf16.msra.mxu1 %v4867_v16 }
0x1396   :  { %v3720_v25 = vpop.f32.mrb[44].mxu0 }
0x1397   :  { %v6036_v26 = vadd.f32 %v3720_v25, %v3641_v21  ;;  %v3722_v27 = vpop.f32.mrb[45].mxu0 }
0x1398   :  { %v6038_v28 = vadd.f32 %v3722_v27, %v3645_v23 }
0x1399   :  { %v6041_v29 = vmul.f32 0.70710677, %v6036_v26 }
0x139a   :  { %v6044_v44 = vmul.f32 0.70710677, %v6038_v28  ;;  %v3726_v46 = vpop.f32.mrb[46].mxu0 }
0x139b   :  { %v3747_v6 = vand.u32 2147483647, %v6041_v29  ;;  %v6047_v60 = vadd.f32 %v3726_v46, %v3641_v21  ;;  %v3728_v47 = vpop.f32.mrb[47].mxu0  ;;  %vm3739_vm11 = vcmp.ge.f32.partialorder %v6041_v29, 0.0 }
0x139c   :  { %v3748_v49 = vand.u32 2147483647, %v6044_v44  ;;  %v6050_v22 = vadd.f32 %v3728_v47, %v3645_v23  ;;  %vm3740_vm12 = vcmp.ge.f32.partialorder %v6044_v44, 0.0 }
0x139d   :  { %v3751_v35 = vmul.f32 0.3275911, %v3747_v6  ;;  %v6053_v54 = vmul.f32 0.70710677, %v6047_v60  ;;  %v3803_v40 = vsub.f32 0.0, %v3747_v6 }
0x139e   :  { %v3752_v36 = vmul.f32 0.3275911, %v3748_v49  ;;  %v6056_v37 = vmul.f32 0.70710677, %v6050_v22  ;;  %v3804_v43 = vsub.f32 0.0, %v3748_v49 }
0x139f   :  { %v3755_v24 = vadd.f32 1.0, %v3751_v35  ;;  %v3749_v10 = vand.u32 2147483647, %v6053_v54  ;;  %v3807_v61 = vmul.f32 %v3803_v40, %v3747_v6  ;;  %vm3741_vm13 = vcmp.ge.f32.partialorder %v6053_v54, 0.0 }
0x13a0   :  { %v3756_v17 = vadd.f32 1.0, %v3752_v36  ;;  %v3750_v38 = vand.u32 2147483647, %v6056_v37  ;;  %v3808_v51 = vmul.f32 %v3804_v43, %v3748_v49  ;;  %vm3742_vm14 = vcmp.ge.f32.partialorder %v6056_v37, 0.0 }
0x13a1   :  { %5010 = vrcp.f32 %v3755_v24  ;;  %v3753_v48 = vmul.f32 0.3275911, %v3749_v10  ;;  %v3805_v52 = vsub.f32 0.0, %v3749_v10  ;;  %v3811_v55 = vmul.f32 1.442695, %v3807_v61 }
0x13a2   :  { %5012 = vrcp.f32 %v3756_v17  ;;  %v3754_v2 = vmul.f32 0.3275911, %v3750_v38  ;;  %v3806_v41 = vsub.f32 0.0, %v3750_v38  ;;  %v3813_v57 = vmul.f32 1.442695, %v3808_v51 }
0x13a3   :  { %v3757_v39 = vadd.f32 1.0, %v3753_v48  ;;  %v3809_v3 = vmul.f32 %v3805_v52, %v3749_v10  ;;  %v3743_v51 = vsel %vm3739_vm11, 1.0, %v5066_v30 }
0x13a4   :  { %v3758_v42 = vadd.f32 1.0, %v3754_v2  ;;  %v3810_v1 = vmul.f32 %v3806_v41, %v3750_v38 }
0x13a5   :  { %5014 = vrcp.f32 %v3757_v39  ;;  %v3815_v62 = vmul.f32 1.442695, %v3809_v3 }
0x13a6   :  { %5016 = vrcp.f32 %v3758_v42  ;;  %v3817_v19 = vmul.f32 1.442695, %v3810_v1 }
0x13a7   :  { %5018 = vpow2.f32 %v3811_v55 }
0x13a8   :  { %5020 = vpow2.f32 %v3813_v57  ;;  %v3732_v57 = vmul.f32 0.5, %v6038_v28  ;;  %v3734_v28 = vmul.f32 0.5, %v6050_v22 }
0x13a9   :  { %5022 = vpow2.f32 %v3815_v62 }
0x13aa   :  { %5024 = vpow2.f32 %v3817_v19 }
0x13ab   :  { %v5011_v63 = vpop.eup %5010 }
0x13ac   :  { %v5013_v34 = vpop.eup %5012  ;;  %v3767_v50 = vmul.f32 1.0614054, %v5011_v63 }
0x13ad   :  { %v3768_v53 = vmul.f32 1.0614054, %v5013_v34 }
0x13ae   :  { %v3771_v9 = vadd.f32 -1.4531521, %v3767_v50 }
0x13af   :  { %v3772_v56 = vadd.f32 -1.4531521, %v3768_v53  ;;  %v5015_v59 = vpop.eup %5014 }
0x13b0   :  { %v3775_v58 = vmul.f32 %v5011_v63, %v3771_v9  ;;  %v3769_v7 = vmul.f32 1.0614054, %v5015_v59  ;;  %v5017_v8 = vpop.eup %5016 }
0x13b1   :  { %v3776_v4 = vmul.f32 %v5013_v34, %v3772_v56  ;;  %v3770_v20 = vmul.f32 1.0614054, %v5017_v8  ;;  %v5019_v10 = vpop.eup %5018 }
0x13b2   :  { %v3779_v0 = vadd.f32 1.4214138, %v3775_v58  ;;  %v3773_v12 = vadd.f32 -1.4531521, %v3769_v7  ;;  %v5021_v39 = vpop.eup %5020  ;;  %v3731_v7 = vmul.f32 0.5, %v6036_v26  ;;  %v3733_v26 = vmul.f32 0.5, %v6047_v60 }
0x13b3   :  { %v3780_v5 = vadd.f32 1.4214138, %v3776_v4  ;;  %v3774_v16 = vadd.f32 -1.4531521, %v3770_v20 }
0x13b4   :  { %v3783_v13 = vmul.f32 %v5011_v63, %v3779_v0  ;;  %v3777_v15 = vmul.f32 %v5015_v59, %v3773_v12 }
0x13b5   :  { %v3784_v14 = vmul.f32 %v5013_v34, %v3780_v5  ;;  %v3778_v27 = vmul.f32 %v5017_v8, %v3774_v16 }
0x13b6   :  { %v3787_v18 = vadd.f32 -0.28449672, %v3783_v13  ;;  %v3781_v23 = vadd.f32 1.4214138, %v3777_v15  ;;  %v3746_v13 = vsel %vm3742_vm14, 1.0, %v5066_v30 }
0x13b7   :  { %v3788_v21 = vadd.f32 -0.28449672, %v3784_v14  ;;  %v3782_v49 = vadd.f32 1.4214138, %v3778_v27 }
0x13b8   :  { %v3791_v25 = vmul.f32 %v5011_v63, %v3787_v18  ;;  %v3785_v6 = vmul.f32 %v5015_v59, %v3781_v23 }
0x13b9   :  { %v3792_v46 = vmul.f32 %v5013_v34, %v3788_v21  ;;  %v3786_v17 = vmul.f32 %v5017_v8, %v3782_v49 }
0x13ba   :  { %v3795_v47 = vadd.f32 0.2548296, %v3791_v25  ;;  %v3789_v36 = vadd.f32 -0.28449672, %v3785_v6 }
0x13bb   :  { %v3796_v35 = vadd.f32 0.2548296, %v3792_v46  ;;  %v3790_v40 = vadd.f32 -0.28449672, %v3786_v17 }
0x13bc   :  { %v3799_v24 = vmul.f32 %v5011_v63, %v3795_v47  ;;  %v3793_v38 = vmul.f32 %v5015_v59, %v3789_v36  ;;  %v5023_v63 = vpop.eup %5022 }
0x13bd   :  { %v3800_v48 = vmul.f32 %v5013_v34, %v3796_v35  ;;  %v3794_v50 = vmul.f32 %v5017_v8, %v3790_v40  ;;  %v3744_v34 = vsel %vm3740_vm12, 1.0, %v5066_v30  ;;  %v5025_v44 = vpop.eup %5024  ;;  %v3999_v40 = vld [vmem:[%s6218_s8 + $0x20] sm:$0xff] }
0x13be   :  { %v3819_v2 = vmul.f32 %v5019_v10, %v3799_v24  ;;  %v3797_v43 = vadd.f32 0.2548296, %v3793_v38  ;;  %v4000_v38 = vld [vmem:[%s6218_s8 + $0x28] sm:$0xff] }
0x13bf   :  { %v3820_v42 = vmul.f32 %v5021_v39, %v3800_v48  ;;  %v3798_v55 = vadd.f32 0.2548296, %v3794_v50  ;;  %v3996_v48 = vld [vmem:[%s6218_s8 + $0x8] sm:$0xff] }
0x13c0   :  { %v3823_v61 = vsub.f32 1.0, %v3819_v2  ;;  %v3801_v53 = vmul.f32 %v5015_v59, %v3797_v43  ;;  %v3745_v59 = vsel %vm3741_vm13, 1.0, %v5066_v30  ;;  %v5031_v30 = vld [vmem:[%s6213_s3 + $0x8] sm:$0x3f]  ;;  %v4869_v39 = vpack.c.bf16 %v4000_v38, %v3996_v48  ;;  %v3995_v2 = vld [vmem:[%s6218_s8] sm:$0xff] }
0x13c1   :  { %v3824_v52 = vsub.f32 1.0, %v3820_v42  ;;  %v3802_v58 = vmul.f32 %v5017_v8, %v3798_v55  ;;  %v3952_v19 = vrot.slane %v5031_v30, %v1994_v11  ;;  %v4871_v42 = vpack.c.bf16 %v3999_v40, %v3995_v2  ;;  %v4004_v43 = vld [vmem:[%s6218_s8 + $0x48] sm:$0xff]  ;;  %v4011_v55 = vld [vmem:[%s6218_s8 + $0x80] sm:$0xff] }
0x13c2   :  { %v3827_v9 = vmul.f32 %v3823_v61, %v3743_v51  ;;  %v3821_v41 = vmul.f32 %v5023_v63, %v3801_v53  ;;  %4870 = vmatprep.subr.bf16.mxu0 %v4869_v39  ;;  %v4008_v61 = vld [vmem:[%s6218_s8 + $0x68] sm:$0xff]  ;;  %v4003_v51 = vld [vmem:[%s6218_s8 + $0x40] sm:$0xff] }
0x13c3   :  { %v3828_v29 = vmul.f32 %v3824_v52, %v3744_v34  ;;  %v3822_v0 = vmul.f32 %v5025_v44, %v3802_v58  ;;  %4872 = vmatpush1.bf16.msra.mxu0 %v4871_v42  ;;  %v4873_v50 = vpack.c.bf16 %v4008_v61, %v4004_v43  ;;  %v4007_v52 = vld [vmem:[%s6218_s8 + $0x60] sm:$0xff]  ;;  %v4012_v63 = vld [vmem:[%s6218_s8 + $0x88] sm:$0xff] }
0x13c4   :  { %v3831_v56 = vadd.f32 1.0, %v3827_v9  ;;  %v3825_v4 = vsub.f32 1.0, %v3821_v41  ;;  %v4875_v53 = vpack.c.bf16 %v4007_v52, %v4003_v51  ;;  %v4016_v9 = vld [vmem:[%s6218_s8 + $0xa8] sm:$0xff] }
0x13c5   :  { %v3832_v3 = vadd.f32 1.0, %v3828_v29  ;;  %v3826_v54 = vsub.f32 1.0, %v3822_v0  ;;  %4874 = vmatprep.subr.bf16.mxu0 %v4873_v50  ;;  %v4877_v34 = vpack.c.bf16 %v4016_v9, %v4012_v63  ;;  %v4015_v29 = vld [vmem:[%s6218_s8 + $0xa0] sm:$0xff]  ;;  %v4024_v58 = vld [vmem:[%s6218_s8 + $0xe8] sm:$0xff] }
0x13c6   :  { %v3829_v5 = vmul.f32 %v3825_v4, %v3745_v59  ;;  %v3835_v12 = vmul.f32 %v3831_v56, %v3731_v7  ;;  %v4879_v41 = vpack.c.bf16 %v4015_v29, %v4011_v55  ;;  %v4020_v56 = vld [vmem:[%s6218_s8 + $0xc8] sm:$0xff]  ;;  %v3998_v7 = vld [vmem:[%s6218_s8 + $0x18] sm:$0xff] }
0x13c7   :  { %v3836_v1 = vmul.f32 %v3832_v3, %v3732_v57  ;;  %v3830_v8 = vmul.f32 %v3826_v54, %v3746_v13  ;;  %4876 = vmatpush1.bf16.msra.mxu0 %v4875_v53  ;;  %v4881_v44 = vpack.c.bf16 %v4024_v58, %v4020_v56  ;;  %v4019_v57 = vld [vmem:[%s6218_s8 + $0xc0] sm:$0xff]  ;;  %v4002_v59 = vld [vmem:[%s6218_s8 + $0x38] sm:$0xff] }
0x13c8   :  { %v3833_v62 = vadd.f32 1.0, %v3829_v5  ;;  %4878 = vmatprep.subr.bf16.mxu0 %v4877_v34  ;;  %v4023_v3 = vld [vmem:[%s6218_s8 + $0xe0] sm:$0xff]  ;;  %v4885_v0 = vpack.c.bf16 %v4002_v59, %v3998_v7 }
0x13c9   :  { %3936 = vmatprep.mubr.f32.mxu1 %v3836_v1  ;;  %v3834_v20 = vadd.f32 1.0, %v3830_v8  ;;  %v4883_v4 = vpack.c.bf16 %v4023_v3, %v4019_v57 }
0x13ca   :  { %3937 = vmatmul.mubr.f32.vlgmr.msra.gmra.mrb[40].mxu1 %v3835_v12  ;;  %v3837_v15 = vmul.f32 %v3833_v62, %v3733_v26  ;;  %v3997_v26 = vld [vmem:[%s6218_s8 + $0x10] sm:$0xff] }
0x13cb   :  { %v3838_v14 = vmul.f32 %v3834_v20, %v3734_v28  ;;  %4880 = vmatpush1.bf16.msra.mxu0 %v4879_v41  ;;  %v4345_v28 = vld [vmem:[%s6217_s7] ss:$0 sm:$0xff] }
0x13cc   :  { %4882 = vmatprep.subr.bf16.mxu0 %v4881_v44 }
0x13cd   :  { %3941 = vmatprep.mubr.f32.mxu1 %v3838_v14  ;;  %v4001_v14 = vld [vmem:[%s6218_s8 + $0x30] sm:$0xff] }
0x13ce   :  { %3942 = vmatmul.mubr.f32.gmra.mrb[42].mxu1 %v3837_v15  ;;  %v4346_v15 = vld [vmem:[%s6217_s7 + $0x1] ss:$0 sm:$0xff]  ;;  %v4887_v30 = vpack.c.bf16 %v4001_v14, %v3997_v26 }
0x13cf   :  { %4884 = vmatpush1.bf16.msra.mxu0 %v4883_v4 }
0x13d0   :  { %4886 = vmatprep.subr.bf16.mxu0 %v4885_v0 }
0x149d   :  { %v4505_v37 = vpop.f32.mrb[40].mxu1 }
0x149e   :  { %v4506_v18 = vpop.f32.mrb[41].mxu1 }
0x149f   :  { %v4507_v16 = vadd.f32 %v4506_v18, %v4505_v37  ;;  %v4006_v37 = vld [vmem:[%s6218_s8 + $0x58] sm:$0xff] }
0x14a0   :  { %v4010_v18 = vld [vmem:[%s6218_s8 + $0x78] sm:$0xff] }
0x14a1   :  { %v3947_v21 = vadd.f32 %v4507_v16, %v5867_v32  ;;  %v4508_v23 = vpop.f32.mrb[42].mxu1 }
0x14a2   :  { %v4509_v25 = vpop.f32.mrb[43].mxu1 }
0x14a3   :  { %v3953_v22 = vadd.f32 %v3952_v19, %v3947_v21  ;;  %v4510_v27 = vadd.f32 %v4509_v25, %v4508_v23  ;;  %v4889_v21 = vpack.c.bf16 %v4010_v18, %v4006_v37  ;;  %v4009_v23 = vld [vmem:[%s6218_s8 + $0x70] sm:$0xff]  ;;  %v4014_v25 = vld [vmem:[%s6218_s8 + $0x98] sm:$0xff] }
0x14a5   :  { %v3957_v60 = vsel %vm42_vm0, %v3953_v22, 0.0  ;;  %v3948_v46 = vadd.f32 %v4510_v27, %v5865_v31 }
0x14a6   :  { %3958 = vadd.xlane.f32.xlu0 %v3957_v60  ;;  %v4018_v60 = vld [vmem:[%s6218_s8 + $0xb8] sm:$0xff] }
0x14a7   :  { %v3954_v6 = vadd.f32 %v3952_v19, %v3948_v46 }
0x14a9   :  { %v3960_v47 = vsel %vm42_vm0, %v3954_v6, 0.0 }
0x14aa   :  { %3961 = vadd.xlane.f32.xlu1 %v3960_v47  ;;  %v4893_v47 = vpack.c.bf16 %v4018_v60, %v4014_v25 }
0x1533   :  { %v3959_v49 = vpop.xlane.xlu0 %3958 }
0x1534   :  { %v3963_v35 = vmul.f32 0.015625, %v3959_v49  ;;  %v4013_v49 = vld [vmem:[%s6218_s8 + $0x90] sm:$0xff] }
0x1536   :  { %v3965_v36 = vsub.f32 %v3953_v22, %v3963_v35  ;;  %v4005_v22 = vld [vmem:[%s6218_s8 + $0x50] sm:$0xff] }
0x1537   :  { %v3962_v11 = vpop.xlane.xlu1 %3961  ;;  %v4017_v35 = vld [vmem:[%s6218_s8 + $0xb0] sm:$0xff] }
0x1538   :  { %v3967_v45 = vmul.f32 %v3965_v36, %v3965_v36  ;;  %v3964_v24 = vmul.f32 0.015625, %v3962_v11  ;;  %v4026_v11 = vld [vmem:[%s6218_s8 + $0xf8] sm:$0xff] }
0x153a   :  { %v3969_v32 = vsel %vm42_vm0, %v3967_v45, 0.0  ;;  %v6082_v17 = vsub.f32 %v3954_v6, %v3964_v24  ;;  %v4891_v6 = vpack.c.bf16 %v4009_v23, %v4005_v22  ;;  %v4022_v45 = vld [vmem:[%s6218_s8 + $0xd8] sm:$0xff]  ;;  %v4895_v24 = vpack.c.bf16 %v4017_v35, %v4013_v49 }
0x153b   :  { %3970 = vadd.xlane.f32.xlu0 %v3969_v32 }
0x153c   :  { %v3968_v10 = vmul.f32 %v6082_v17, %v6082_v17 }
0x153e   :  { %v3972_v31 = vsel %vm42_vm0, %v3968_v10, 0.0  ;;  %v4021_v10 = vld [vmem:[%s6218_s8 + $0xd0] sm:$0xff] }
0x153f   :  { %3973 = vadd.xlane.f32.xlu1 %v3972_v31  ;;  %v4025_v31 = vld [vmem:[%s6218_s8 + $0xf0] sm:$0xff]  ;;  %s5067_s8 = smov [#allocation2]  }
0x1540   :  { %v4899_v48 = vpack.c.bf16 %v4025_v31, %v4021_v10  ;;  %s4200_s30 = sshll.u32 %s5067_s8, 4  ;;  %s4201_s30 = int_to_ptr.vmem [resolvable:$true] %s4200_s30 }
0x1541   :  { %s5032_s10 = scalar_lea.vmem %s4201_s30, 1024  ;;  %p5037_p1 = scmp.lt.s32.totalorder %s4201_s30, %s4201_s30 }
0x1542   :  { %p5033_p0 = scmp.ne.s32.totalorder %s4201_s30, %s5032_s10  ;;  %p5038_p2 = scmp.lt.s32.totalorder %s5032_s10, %s5032_s10 }
0x1544   :  { %p5039_p3 = por %p5038_p2, %p5037_p1 }
0x1546   :  { %p5040_p4 = pnand %p5039_p3, %p5033_p0 }
0x15c8   :  { %v3971_v1 = vpop.xlane.xlu0 %3970 }
0x15c9   :  { %v3975_v5 = vmul.f32 0.015625, %v3971_v1 }
0x15cb   :  { %v3977_v12 = vadd.f32 1e-05, %v3975_v5 }
0x15cc   :  { %v3974_v54 = vpop.xlane.xlu1 %3973 }
0x15cd   :  { %5026 = vrsqrt.f32 %v3977_v12  ;;  %v3976_v13 = vmul.f32 0.015625, %v3974_v54 }
0x15cf   :  { %v3978_v8 = vadd.f32 1e-05, %v3976_v13 }
0x15d1   :  { %5028 = vrsqrt.f32 %v3978_v8 }
0x15d7   :  { %v5027_v62 = vpop.eup %5026 }
0x15d8   :  { %v3981_v20 = vmul.f32 %v5027_v62, %v3965_v36 }
0x15da   :  { %v3987_v16 = vmul.f32 %v4345_v28, %v3981_v20 }
0x15db   :  { %v5029_v27 = vpop.eup %5028 }
0x15dc   :  { %v3993_v19 = vadd.f32 %v4346_v15, %v3987_v16  ;;  %v3982_v46 = vmul.f32 %v5029_v27, %v6082_v17  ;;  %v4897_v17 = vpack.c.bf16 %v4026_v11, %v4022_v45 }
0x15de   :  { %4347 = vmatmul.mubr.msk.f32.vlgmr.msra.gmra.mrb[48].mxu0 %vm42_vm0, %v3993_v19  ;;  %v3988_v36 = vmul.f32 %v4345_v28, %v3982_v46 }
0x15df   :  { %4888 = vmatpush1.bf16.msra.mxu0 %v4887_v30  ;;  %4103 = vmatprep.mubr.f32.mxu0 %v5056_v33 }
0x15e0   :  { %4890 = vmatprep.subr.bf16.mxu0 %v4889_v21  ;;  %v3994_v32 = vadd.f32 %v4346_v15, %v3988_v36 }
0x15e2   :  { %4348 = vmatmul.mubr.msk.f32.gmra.mrb[50].mxu0 %vm42_vm0, %v3994_v32 }
0x15e3   :  { %4892 = vmatpush1.bf16.msra.mxu0 %v4891_v6  ;;  %4174 = vmatprep.mubr.f32.mxu0 %v5056_v33 }
0x15e4   :  { %4894 = vmatprep.subr.bf16.mxu0 %v4893_v47 }
0x15e7   :  { %4896 = vmatpush1.bf16.msra.mxu0 %v4895_v24 }
0x15e8   :  { %4898 = vmatprep.subr.bf16.mxu0 %v4897_v17 }
0x15eb   :  { %4900 = vmatpush1.bf16.msra.mxu0 %v4899_v48 }
0x15ee   :  { %4349 = vmatmul.mubr.msk.f32.vlgmr.msra.gmra.mrb[52].mxu0 %vm42_vm0, %v3993_v19 }
0x15ef   :  { %4180 = vmatprep.mubr.f32.mxu0 %v5056_v33 }
0x15f2   :  { %4350 = vmatmul.mubr.msk.f32.gmra.mrb[54].mxu0 %vm42_vm0, %v3994_v32 }
0x16b1   :  { %v4099_v38 = vpop.f32.mrb[48].mxu0 }
0x16b2   :  { %4187 = vst [vmem:[#allocation2] sm:$0xff] %v4099_v38  ;;  %v4101_v39 = vpop.f32.mrb[49].mxu0 }
0x16b3   :  { %4188 = vst [vmem:[#allocation2 + $0x8] sm:$0xff] %v4101_v39 }
0x16b5   :  { %v4105_v2 = vpop.f32.mrb[50].mxu0 }
0x16b6   :  { %4191 = vst [vmem:[#allocation2 + $0x20] sm:$0xff] %v4105_v2  ;;  %v4107_v40 = vpop.f32.mrb[51].mxu0 }
0x16b7   :  { %4192 = vst [vmem:[#allocation2 + $0x28] sm:$0xff] %v4107_v40 }
0x16c1   :  { %v4176_v42 = vpop.f32.mrb[52].mxu0 }
0x16c2   :  { %4189 = vst [vmem:[#allocation2 + $0x10] sm:$0xff] %v4176_v42  ;;  %v4178_v43 = vpop.f32.mrb[53].mxu0 }
0x16c3   :  { %4190 = vst [vmem:[#allocation2 + $0x18] sm:$0xff] %v4178_v43 }
0x16c5   :  { %v4182_v61 = vpop.f32.mrb[54].mxu0 }
0x16c6   :  { %4193 = vst [vmem:[#allocation2 + $0x30] sm:$0xff] %v4182_v61  ;;  %v4184_v33 = vpop.f32.mrb[55].mxu0 }
0x16c7   :  { %4194 = vst [vmem:[#allocation2 + $0x38] sm:$0xff] %v4184_v33 }
0x16c8   :  { %5043 = shalt.err (!%p5040_p4)
}
0x16c9   :  { %s5044_s0 = scalar_lea.hbm %s6219_s9, 1024 }
0x16ca   :  { %p5045_p5 = scmp.ne.s32.totalorder %s6219_s9, %s5044_s0  ;;  %p5048_p6 = scmp.lt.u32.totalorder %s5044_s0, %s6219_s9 }
0x16cc   :  { %p5050_p7 = pnand %p5048_p6, %p5045_p5 }
0x16ce   :  { %5053 = shalt.err (!%p5050_p7)
}
0x16cf   :  { %s5068_s2 = smov 512  }
0x16d0   :  { %4206 = dma.vmem_to_hbm [thread:$0]  %s4201_s30, 1024, %s6219_s9, [#allocation3], %s5068_s2, %s5068_s2, %s5064_s23  }
0x16d1   :  { %5054 = dma.done.wait [#allocation3], 1024  }
0x16d2   :  { %5055 = vsyncadd [#allocation3], 4294966272 }
0x16d3   :  { %4210 = vsyncpa [#allocation3], 1 }

</bundles_post_ra>
